<compile_context>
chip_gen: v7x
topology: tpu7x:2x2x1
jax: 0.10.0
libtpu: 0.0.40
codegen_flags: <defaults>
</compile_context>

<pallas_src>
import functools

import jax
import jax.numpy as jnp
from jax.experimental import pallas as pl
from jax.experimental.pallas import tpu as pltpu

DROPOUT_P = 0.2
N_EMBED = 384  # matches the PyTorch module default


def _round_up(a, m):
    return (a + m - 1) // m * m


def _ffn_kernel(x_ref, w1_ref, b1_ref, w2_ref, b2_ref, *rest, p):
    if p > 0.0:
        bits_ref, o_ref = rest
    else:
        (o_ref,) = rest

    # First linear + ReLU: bf16 operands, f32 accumulation on the MXU.
    h = jnp.dot(x_ref[...], w1_ref[...], preferred_element_type=jnp.float32)
    h = jnp.maximum(h + b1_ref[...], 0.0)
    # Feed the second MXU pass in bf16 as well (halves vreg/VMEM footprint of h).
    h = h.astype(w2_ref.dtype)

    y = jnp.dot(h, w2_ref[...], preferred_element_type=jnp.float32) + b2_ref[...]

    if p > 0.0:
        # Inverted dropout via a pure integer compare on pre-generated bits.
        threshold = jnp.uint32(min(int(p * 4294967296.0), 4294967295))
        keep = bits_ref[...] >= threshold
        y = jnp.where(keep, y, 0.0) * (1.0 / (1.0 - p))

    o_ref[...] = y.astype(o_ref.dtype)


def feed_forward(x, params, *, p=DROPOUT_P, key=None):
    """x: [B, T, C] float32.  params: w1 [C,4C], b1 [4C], w2 [4C,C], b2 [C]."""
    B, T, C = x.shape
    H = params["w1"].shape[1]
    M = B * T

    # Row-block size: 256 is MXU-aligned on v6e/v7x and a multiple of 128 for
    # v5e.  Small problems collapse to a single (8-aligned) block; large ones
    # are padded up to a multiple of tm and sliced back afterwards.
    TM_TARGET = 256
    if M >= TM_TARGET:
        tm = TM_TARGET
        m_pad = _round_up(M, tm)
    else:
        m_pad = _round_up(M, 8)
        tm = m_pad

    x2d = x.reshape(M, C)
    if m_pad != M:
        x2d = jnp.pad(x2d, ((0, m_pad - M), (0, 0)))
    x2d = x2d.astype(jnp.bfloat16)

    w1 = params["w1"].astype(jnp.bfloat16)
    w2 = params["w2"].astype(jnp.bfloat16)
    b1 = params["b1"].reshape(1, H).astype(jnp.float32)
    b2 = params["b2"].reshape(1, C).astype(jnp.float32)

    inputs = [x2d, w1, b1, w2, b2]
    in_specs = [
        pl.BlockSpec((tm, C), lambda i: (i, 0)),   # x: marches with the grid
        pl.BlockSpec((C, H), lambda i: (0, 0)),    # w1: resident
        pl.BlockSpec((1, H), lambda i: (0, 0)),    # b1: resident
        pl.BlockSpec((H, C), lambda i: (0, 0)),    # w2: resident
        pl.BlockSpec((1, C), lambda i: (0, 0)),    # b2: resident
    ]

    bits_bytes = 0
    if p > 0.0:
        if key is None:
            key = jax.random.PRNGKey(0)
        bits = jax.random.bits(key, (m_pad, C), dtype=jnp.uint32)
        inputs.append(bits)
        in_specs.append(pl.BlockSpec((tm, C), lambda i: (i, 0)))
        bits_bytes = bits.size * 4

    flops = 4 * m_pad * C * H  # two [m, C]x[C, H] / [m, H]x[H, C] matmuls
    bytes_accessed = (
        x2d.size * 2 + w1.size * 2 + w2.size * 2
        + b1.size * 4 + b2.size * 4 + bits_bytes + m_pad * C * 4
    )

    out2d = pl.pallas_call(
        functools.partial(_ffn_kernel, p=p),
        out_shape=jax.ShapeDtypeStruct((m_pad, C), x.dtype),
        grid_spec=pltpu.PrefetchScalarGridSpec(
            num_scalar_prefetch=0,
            grid=(m_pad // tm,),
            in_specs=in_specs,
            out_specs=pl.BlockSpec((tm, C), lambda i: (i, 0)),
        ),
        compiler_params=pltpu.CompilerParams(
            dimension_semantics=("parallel",)),
        cost_estimate=pl.CostEstimate(
            flops=flops, transcendentals=0, bytes_accessed=bytes_accessed),
    )(*inputs)

    return out2d[:M].reshape(B, T, C)


def init_params(key, n_embed=N_EMBED):
    """Deterministic init mimicking nn.Linear's U(-1/sqrt(fan_in), 1/sqrt(fan_in))."""
    h = 4 * n_embed
    k1, k2, k3, k4 = jax.random.split(key, 4)
    lim1 = 1.0 / jnp.sqrt(n_embed)
    lim2 = 1.0 / jnp.sqrt(h)
    # Pre-transposed to [in, out] so the kernel computes x @ W directly.
    return {
        "w1": jax.random.uniform(k1, (n_embed, h), jnp.float32, -lim1, lim1),
        "b1": jax.random.uniform(k2, (h,), jnp.float32, -lim1, lim1),
        "w2": jax.random.uniform(k3, (h, n_embed), jnp.float32, -lim2, lim2),
        "b2": jax.random.uniform(k4, (n_embed,), jnp.float32, -lim2, lim2),
    }


if __name__ == "__main__":
    key = jax.random.PRNGKey(0)
    kp, kx = jax.random.split(key)
    params = init_params(kp, N_EMBED)

    B, T = 2, 8
    x = jax.random.normal(kx, (B, T, N_EMBED), dtype=jnp.float32)

    # Deterministic check (dropout disabled) against a pure-f32 JAX reference.
    # Loose tolerance accounts for the bf16 MXU inputs (f32 accumulation).
    y_det = feed_forward(x, params, p=0.0)
    h_ref = jnp.maximum(x.reshape(-1, N_EMBED) @ params["w1"] + params["b1"], 0.0)
    y_ref = (h_ref @ params["w2"] + params["b2"]).reshape(B, T, N_EMBED)
    assert jnp.allclose(y_det, y_ref, atol=5e-2, rtol=5e-2), "mismatch vs reference"

    # Training-mode run (dropout active; mask bits streamed in, different RNG
    # stream than PyTorch's nn.Dropout but same keep-probability semantics).
    y_train = feed_forward(x, params, p=DROPOUT_P, key=jax.random.PRNGKey(42))
    jax.block_until_ready(y_train)
    print("KERNEL_OK")
</pallas_src>

<mosaic_0001>
module attributes {stable_mosaic.version = 11 : i64} {
  func.func @_ffn_kernel(%arg0: i32, %arg1: memref<16x384xbf16, #tpu.memory_space<vmem>>, %arg2: memref<384x1536xbf16, #tpu.memory_space<vmem>>, %arg3: memref<1x1536xf32, #tpu.memory_space<vmem>>, %arg4: memref<1536x384xbf16, #tpu.memory_space<vmem>>, %arg5: memref<1x384xf32, #tpu.memory_space<vmem>>, %arg6: memref<16x384xf32, #tpu.memory_space<vmem>>) attributes {dimension_semantics = [#tpu.dimension_semantics<parallel>], iteration_bounds = array<i64: 1>, scalar_prefetch = 0 : i64, scratch_operands = 0 : i64, tpu.core_type = #tpu.core_type<tc>, window_params = [{transform_indices = @transform_0, window_bounds = array<i64: 16, 384>}, {pipeline_mode = #tpu.pipeline_mode<synchronous>, transform_indices = @transform_1, window_bounds = array<i64: 384, 1536>}, {pipeline_mode = #tpu.pipeline_mode<synchronous>, transform_indices = @transform_2, window_bounds = array<i64: 1, 1536>}, {pipeline_mode = #tpu.pipeline_mode<synchronous>, transform_indices = @transform_3, window_bounds = array<i64: 1536, 384>}, {pipeline_mode = #tpu.pipeline_mode<synchronous>, transform_indices = @transform_4, window_bounds = array<i64: 1, 384>}, {transform_indices = @transform_5, window_bounds = array<i64: 16, 384>}]} {
    %c0 = arith.constant 0 : index
    %c0_0 = arith.constant 0 : index
    %0 = vector.load %arg1[%c0, %c0_0] : memref<16x384xbf16, #tpu.memory_space<vmem>>, vector<16x384xbf16>
    %c0_1 = arith.constant 0 : index
    %c0_2 = arith.constant 0 : index
    %1 = vector.load %arg2[%c0_1, %c0_2] : memref<384x1536xbf16, #tpu.memory_space<vmem>>, vector<384x1536xbf16>
    %cst = arith.constant dense<0.000000e+00> : vector<16x1536xf32>
    %2 = tpu.matmul %0, %1, %cst {dimension_numbers = #tpu.dot_dimension_numbers<[1], [0], [0], [1], [0, 0, 1, 1], [], []>} : vector<16x384xbf16>, vector<384x1536xbf16>, vector<16x1536xf32> -> vector<16x1536xf32>
    %c0_3 = arith.constant 0 : index
    %c0_4 = arith.constant 0 : index
    %3 = vector.load %arg3[%c0_3, %c0_4] : memref<1x1536xf32, #tpu.memory_space<vmem>>, vector<1x1536xf32>
    %4 = vector.broadcast %3 : vector<1x1536xf32> to vector<16x1536xf32>
    %5 = arith.addf %2, %4 : vector<16x1536xf32>
    %cst_5 = arith.constant 0.000000e+00 : f32
    %6 = vector.broadcast %cst_5 : f32 to vector<16x1536xf32>
    %7 = arith.maximumf %5, %6 : vector<16x1536xf32>
    %8 = arith.truncf %7 : vector<16x1536xf32> to vector<16x1536xbf16>
    %c0_6 = arith.constant 0 : index
    %c0_7 = arith.constant 0 : index
    %9 = vector.load %arg4[%c0_6, %c0_7] : memref<1536x384xbf16, #tpu.memory_space<vmem>>, vector<1536x384xbf16>
    %cst_8 = arith.constant dense<0.000000e+00> : vector<16x384xf32>
    %10 = tpu.matmul %8, %9, %cst_8 {dimension_numbers = #tpu.dot_dimension_numbers<[1], [0], [0], [1], [0, 0, 1, 1], [], []>} : vector<16x1536xbf16>, vector<1536x384xbf16>, vector<16x384xf32> -> vector<16x384xf32>
    %c0_9 = arith.constant 0 : index
    %c0_10 = arith.constant 0 : index
    %11 = vector.load %arg5[%c0_9, %c0_10] : memref<1x384xf32, #tpu.memory_space<vmem>>, vector<1x384xf32>
    %12 = vector.broadcast %11 : vector<1x384xf32> to vector<16x384xf32>
    %13 = arith.addf %10, %12 : vector<16x384xf32>
    %c0_11 = arith.constant 0 : index
    %c0_12 = arith.constant 0 : index
    %14 = vector.load %arg6[%c0_11, %c0_12] : memref<16x384xf32, #tpu.memory_space<vmem>>, vector<16x384xf32>
    tpu.vector_store %arg6[%c0_11, %c0_12], %13 {strides = array<i32>} : memref<16x384xf32, #tpu.memory_space<vmem>>, vector<16x384xf32>,
    return
  }
  func.func @transform_0(%arg0: i32) -> (i32, i32) {
    %c0_i32 = arith.constant 0 : i32
    %c0_i32_0 = arith.constant 0 : i32
    return %arg0, %c0_i32 : i32, i32
  }
  func.func @transform_1(%arg0: i32) -> (i32, i32) {
    %c0_i32 = arith.constant 0 : i32
    %c0_i32_0 = arith.constant 0 : i32
    %c0_i32_1 = arith.constant 0 : i32
    return %c0_i32, %c0_i32_0 : i32, i32
  }
  func.func @transform_2(%arg0: i32) -> (i32, i32) {
    %c0_i32 = arith.constant 0 : i32
    %c0_i32_0 = arith.constant 0 : i32
    %c0_i32_1 = arith.constant 0 : i32
    return %c0_i32, %c0_i32_0 : i32, i32
  }
  func.func @transform_3(%arg0: i32) -> (i32, i32) {
    %c0_i32 = arith.constant 0 : i32
    %c0_i32_0 = arith.constant 0 : i32
    %c0_i32_1 = arith.constant 0 : i32
    return %c0_i32, %c0_i32_0 : i32, i32
  }
  func.func @transform_4(%arg0: i32) -> (i32, i32) {
    %c0_i32 = arith.constant 0 : i32
    %c0_i32_0 = arith.constant 0 : i32
    %c0_i32_1 = arith.constant 0 : i32
    return %c0_i32, %c0_i32_0 : i32, i32
  }
  func.func @transform_5(%arg0: i32) -> (i32, i32) {
    %c0_i32 = arith.constant 0 : i32
    %c0_i32_0 = arith.constant 0 : i32
    return %arg0, %c0_i32 : i32, i32
  }
}

</mosaic_0001>

<bundles_post_ra>
// kernel: tpu_custom_call.1
= control target key start
LH: loop header
LB: loop body
LE: loop exit
PB: predicated region body
PF: predicated region fallthrough
CT: control target
= control target key end

     0   :  { %10 = vsyncpa [#allocation3], 0  ;;  %s6906_s0 = inlined_call_operand.hbm [shape: bf16[16,384], index: 0, kind: input, shape index: {}]   ;;  %s6907_s1 = inlined_call_operand.hbm [shape: bf16[384,1536], index: 1, kind: input, shape index: {}]   ;;  %s6908_s2 = inlined_call_operand.hbm [shape: f32[1,1536], index: 2, kind: input, shape index: {}]   ;;  %s6909_s3 = inlined_call_operand.hbm [shape: bf16[1536,384], index: 3, kind: input, shape index: {}]   ;;  %s6910_s4 = inlined_call_operand.hbm [shape: f32[1,384], index: 4, kind: input, shape index: {}]   ;;  %s6911_s5 = inlined_call_operand.hbm [shape: f32[16,384], index: 5, kind: output, shape index: {}]  }
   0x1   :  { %11 = vsyncpa [#allocation6], 0 }
   0x2   :  { %12 = vsyncpa [#allocation9], 0 }
   0x3   :  { %13 = vsyncpa [#allocation4], 0  ;;  %s6676_s18 = smov [#allocation5]   ;;  %s6536_s22 = scalar_lea.hbm %s6907_s1, 36864 }
   0x4   :  { %s31_s19 = sshll.u32 %s6676_s18, 4  ;;  %p6537_p0 = scmp.ne.s32.totalorder %s6907_s1, %s6536_s22  ;;  %s32_s19 = int_to_ptr.vmem [resolvable:$true] %s31_s19 }
   0x5   :  { %p6540_p1 = scmp.lt.u32.totalorder %s6536_s22, %s6907_s1 }
   0x7   :  { %p6542_p2 = pnand %p6540_p1, %p6537_p0 }
   0x9   :  { %6545 = shalt.err (!%p6542_p2)
}
   0xa   :  { %s6546_s27 = scalar_lea.vmem %s32_s19, 36864  ;;  %p6551_p4 = scmp.lt.s32.totalorder %s32_s19, %s32_s19 }
   0xb   :  { %p6547_p3 = scmp.ne.s32.totalorder %s32_s19, %s6546_s27  ;;  %p6552_p5 = scmp.lt.s32.totalorder %s6546_s27, %s6546_s27 }
   0xd   :  { %p6553_p6 = por %p6552_p5, %p6551_p4 }
   0xf   :  { %p6554_p7 = pnand %p6553_p6, %p6547_p3 }
  0x11   :  { %6557 = shalt.err (!%p6554_p7)
}
  0x12   :  { %s6677_s28 = smov 768   ;;  %s6678_s29 = smov 48  }
  0x13   :  { %37 = dma.hbm_to_vmem [thread:$0]  %s6907_s1, 36864, %s32_s19, [#allocation6], %s6677_s28, %s6677_s28, %s6678_s29  }
  0x14   :  { %s6679_s7 = smov [#allocation8]   ;;  %s6680_s9 = smov [#allocation2]  }
  0x15   :  { %s53_s8 = sshll.u32 %s6679_s7, 4  ;;  %s19_s10 = sshll.u32 %s6680_s9, 4  ;;  %s54_s8 = int_to_ptr.vmem [resolvable:$true] %s53_s8  ;;  %s20_s10 = int_to_ptr.vmem [resolvable:$true] %s19_s10 }
  0x16   :  { %s6558_s13 = scalar_lea.hbm %s6909_s3, 36864 }
  0x17   :  { %p6559_p8 = scmp.ne.s32.totalorder %s6909_s3, %s6558_s13  ;;  %p6562_p9 = scmp.lt.u32.totalorder %s6558_s13, %s6909_s3 }
  0x19   :  { %p6564_p10 = pnand %p6562_p9, %p6559_p8 }
  0x1b   :  { %6567 = shalt.err (!%p6564_p10)
}
  0x1c   :  { %s6568_s1 = scalar_lea.vmem %s54_s8, 36864  ;;  %p6573_p12 = scmp.lt.s32.totalorder %s54_s8, %s54_s8 }
  0x1d   :  { %p6569_p11 = scmp.ne.s32.totalorder %s54_s8, %s6568_s1  ;;  %p6574_p13 = scmp.lt.s32.totalorder %s6568_s1, %s6568_s1 }
  0x1f   :  { %p6575_p0 = por %p6574_p13, %p6573_p12 }
  0x21   :  { %p6576_p1 = pnand %p6575_p0, %p6569_p11 }
  0x23   :  { %6579 = shalt.err (!%p6576_p1)
}
  0x24   :  { %s6681_s18 = smov 192   ;;  %s6682_s19 = smov 12  }
  0x25   :  { %59 = dma.hbm_to_vmem [thread:$0]  %s6909_s3, 36864, %s54_s8, [#allocation9], %s6681_s18, %s6681_s18, %s6682_s19  }
  0x26   :  { %s6580_s24 = scalar_lea.hbm %s6906_s0, 384 }
  0x27   :  { %p6581_p2 = scmp.ne.s32.totalorder %s6906_s0, %s6580_s24  ;;  %p6584_p3 = scmp.lt.u32.totalorder %s6580_s24, %s6906_s0 }
  0x29   :  { %p6586_p4 = pnand %p6584_p3, %p6581_p2 }
  0x2b   :  { %6589 = shalt.err (!%p6586_p4)
}
  0x2c   :  { %s6590_s29 = scalar_lea.vmem %s20_s10, 384  ;;  %p6595_p6 = scmp.lt.s32.totalorder %s20_s10, %s20_s10 }
  0x2d   :  { %p6591_p5 = scmp.ne.s32.totalorder %s20_s10, %s6590_s29  ;;  %p6596_p7 = scmp.lt.s32.totalorder %s6590_s29, %s6590_s29 }
  0x2f   :  { %p6597_p8 = por %p6596_p7, %p6595_p6 }
  0x31   :  { %p6598_p9 = pnand %p6597_p8, %p6591_p5 }
  0x33   :  { %6601 = shalt.err (!%p6598_p9)
}
  0x34   :  { %25 = dma.hbm_to_vmem [thread:$0]  %s6906_s0, 384, %s20_s10, [#allocation3], %s6681_s18, %s6681_s18, %s6682_s19  }
  0x35   :  { %s6683_s6 = smov [#allocation7]   ;;  %s6684_s8 = smov [#allocation10]  }
  0x36   :  { %s44_s7 = sshll.u32 %s6683_s6, 4  ;;  %s66_s9 = sshll.u32 %s6684_s8, 4  ;;  %s45_s7 = int_to_ptr.vmem [resolvable:$true] %s44_s7  ;;  %s67_s9 = int_to_ptr.vmem [resolvable:$true] %s66_s9 }
  0x37   :  { %s6602_s13 = scalar_lea.hbm %s6908_s2, 192 }
  0x38   :  { %p6603_p10 = scmp.ne.s32.totalorder %s6908_s2, %s6602_s13  ;;  %p6606_p11 = scmp.lt.u32.totalorder %s6602_s13, %s6908_s2 }
  0x3a   :  { %p6608_p12 = pnand %p6606_p11, %p6603_p10 }
  0x3c   :  { %6611 = shalt.err (!%p6608_p12)
}
  0x3d   :  { %s6612_s0 = scalar_lea.vmem %s45_s7, 192  ;;  %p6617_p0 = scmp.lt.s32.totalorder %s45_s7, %s45_s7 }
  0x3e   :  { %p6613_p13 = scmp.ne.s32.totalorder %s45_s7, %s6612_s0  ;;  %p6618_p1 = scmp.lt.s32.totalorder %s6612_s0, %s6612_s0 }
  0x40   :  { %p6619_p2 = por %p6618_p1, %p6617_p0 }
  0x42   :  { %p6620_p3 = pnand %p6619_p2, %p6613_p13 }
  0x44   :  { %6623 = shalt.err (!%p6620_p3)
}
  0x45   :  { %47 = dma.hbm_to_vmem [thread:$0]  %s6908_s2, 192, %s45_s7, [#allocation6]  }
  0x46   :  { %s6624_s20 = scalar_lea.hbm %s6910_s4, 48 }
  0x47   :  { %p6625_p4 = scmp.ne.s32.totalorder %s6910_s4, %s6624_s20  ;;  %p6628_p5 = scmp.lt.u32.totalorder %s6624_s20, %s6910_s4 }
  0x49   :  { %p6630_p6 = pnand %p6628_p5, %p6625_p4 }
  0x4b   :  { %6633 = shalt.err (!%p6630_p6)
}
  0x4c   :  { %s6634_s25 = scalar_lea.vmem %s67_s9, 48  ;;  %s6638_s26 = scalar_lea.vmem %s67_s9, 64 }
  0x4d   :  { %p6635_p7 = scmp.ne.s32.totalorder %s67_s9, %s6634_s25  ;;  %p6639_p8 = scmp.lt.s32.totalorder %s67_s9, %s67_s9 }
  0x4e   :  { %p6640_p9 = scmp.lt.s32.totalorder %s6638_s26, %s6634_s25 }
  0x50   :  { %p6641_p10 = por %p6640_p9, %p6639_p8 }
  0x52   :  { %p6642_p11 = pnand %p6641_p10, %p6635_p7 }
  0x54   :  { %6645 = shalt.err (!%p6642_p11)
}
  0x55   :  { %69 = dma.hbm_to_vmem [thread:$0]  %s6910_s4, 48, %s67_s9, [#allocation9]  }
  0x56   :  { %6668 = dma.done.wait [#allocation3], 384  }
  0x57   :  { %6669 = vsyncadd [#allocation3], 4294966912 }
  0x58   :  { %6670 = dma.done.wait [#allocation6], 37056  }
  0x59   :  { %6671 = vsyncadd [#allocation6], 4294930240 }
  0x5a   :  { %6672 = dma.done.wait [#allocation9], 36912  }
  0x5b   :  { %6673 = vsyncadd [#allocation9], 4294930384  ;;  %v5712_v0 = vld [vmem:[#allocation5 + $0x4] ss:$48 sps:$4 sm:$0xff]   ;;  %v5714_v1 = vld [vmem:[#allocation5] ss:$48 sps:$4 sm:$0xff]  }
  0x5c   :  { %1898 = vmatprep.subr.bf16.mxu1 %v5712_v0  ;;  %v5715_v2 = vld [vmem:[#allocation5 + $0x64] ss:$48 sps:$4 sm:$0xff]   ;;  %v5717_v3 = vld [vmem:[#allocation5 + $0x60] ss:$48 sps:$4 sm:$0xff]   ;;  %v6779_v18 = vld [vmem:[#allocation2 + $0x4] ss:$12 sps:$4 sm:$0xff]  }
  0x5d   :  { %1899 = vmatpush1.bf16.msra.mxu1 %v5714_v1  ;;  %v5718_v4 = vld [vmem:[#allocation5 + $0xc4] ss:$48 sps:$4 sm:$0xff]   ;;  %v5720_v5 = vld [vmem:[#allocation5 + $0xc0] ss:$48 sps:$4 sm:$0xff]   ;;  %1930 = vmatprep.mubr.bf16.mxu1 %v6779_v18  ;;  %v6685_v63 = vmov 0   ;;  %s6686_s4 = smov [#allocation11]  }
  0x5e   :  { %1900 = vmatprep.subr.bf16.mxu1 %v5715_v2  ;;  %v5721_v6 = vld [vmem:[#allocation5 + $0x124] ss:$48 sps:$4 sm:$0xff]   ;;  %v5723_v7 = vld [vmem:[#allocation5 + $0x120] ss:$48 sps:$4 sm:$0xff]   ;;  %2102 = vmatprep.mubr.bf16.mxu0 %v6779_v18  ;;  %s4902_s28 = sshll.u32 %s6686_s4, 4  ;;  %s4903_s28 = int_to_ptr.vmem [resolvable:$true] %s4902_s28 }
  0x5f   :  { %v5724_v8 = vld [vmem:[#allocation5 + $0x184] ss:$48 sps:$4 sm:$0xff]   ;;  %v5726_v9 = vld [vmem:[#allocation5 + $0x180] ss:$48 sps:$4 sm:$0xff]   ;;  %s6646_s29 = scalar_lea.vmem %s4903_s28, 768  ;;  %p6651_p13 = scmp.lt.s32.totalorder %s4903_s28, %s4903_s28 }
  0x60   :  { %v5727_v10 = vld [vmem:[#allocation5 + $0x1e4] ss:$48 sps:$4 sm:$0xff]   ;;  %v5729_v11 = vld [vmem:[#allocation5 + $0x1e0] ss:$48 sps:$4 sm:$0xff]   ;;  %p6647_p12 = scmp.ne.s32.totalorder %s4903_s28, %s6646_s29  ;;  %p6652_p0 = scmp.lt.s32.totalorder %s6646_s29, %s6646_s29 }
  0x61   :  { %1901 = vmatpush1.bf16.msra.mxu1 %v5717_v3  ;;  %v5730_v12 = vld [vmem:[#allocation5 + $0x244] ss:$48 sps:$4 sm:$0xff]   ;;  %v5732_v14 = vld [vmem:[#allocation5 + $0x240] ss:$48 sps:$4 sm:$0xff]  }
  0x62   :  { %1902 = vmatprep.subr.bf16.mxu1 %v5718_v4  ;;  %v5757_v13 = vld [vmem:[#allocation5 + $0x14] ss:$48 sps:$4 sm:$0xff]   ;;  %v5761_v16 = vld [vmem:[#allocation5 + $0x10] ss:$48 sps:$4 sm:$0xff]   ;;  %p6653_p1 = por %p6652_p0, %p6651_p13 }
  0x63   :  { %v5733_v15 = vld [vmem:[#allocation5 + $0x2a4] ss:$48 sps:$4 sm:$0xff]   ;;  %2070 = vmatprep.subr.bf16.mxu0 %v5757_v13  ;;  %v5735_v19 = vld [vmem:[#allocation5 + $0x2a0] ss:$48 sps:$4 sm:$0xff]  }
  0x64   :  { %v5763_v17 = vld [vmem:[#allocation5 + $0x74] ss:$48 sps:$4 sm:$0xff]   ;;  %2071 = vmatpush1.bf16.msra.mxu0 %v5761_v16  ;;  %v5770_v20 = vld [vmem:[#allocation5 + $0x70] ss:$48 sps:$4 sm:$0xff]   ;;  %p6654_p2 = pnand %p6653_p1, %p6647_p12 }
  0x65   :  { %1903 = vmatpush1.bf16.msra.mxu1 %v5720_v5  ;;  %2072 = vmatprep.subr.bf16.mxu0 %v5763_v17  ;;  %v5772_v21 = vld [vmem:[#allocation5 + $0xd4] ss:$48 sps:$4 sm:$0xff]   ;;  %v5777_v23 = vld [vmem:[#allocation5 + $0xd0] ss:$48 sps:$4 sm:$0xff]  }
  0x66   :  { %1904 = vmatprep.subr.bf16.mxu1 %v5721_v6  ;;  %v5736_v22 = vld [vmem:[#allocation5 + $0x304] ss:$48 sps:$4 sm:$0xff]   ;;  %v5738_v25 = vld [vmem:[#allocation5 + $0x300] ss:$48 sps:$4 sm:$0xff]  }
  0x67   :  { %v5778_v24 = vld [vmem:[#allocation5 + $0x134] ss:$48 sps:$4 sm:$0xff]   ;;  %v5783_v27 = vld [vmem:[#allocation5 + $0x130] ss:$48 sps:$4 sm:$0xff]  }
  0x68   :  { %2073 = vmatpush1.bf16.msra.mxu0 %v5770_v20  ;;  %v5739_v26 = vld [vmem:[#allocation5 + $0x364] ss:$48 sps:$4 sm:$0xff]   ;;  %v5741_v29 = vld [vmem:[#allocation5 + $0x360] ss:$48 sps:$4 sm:$0xff]  }
  0x69   :  { %1905 = vmatpush1.bf16.msra.mxu1 %v5723_v7  ;;  %2074 = vmatprep.subr.bf16.mxu0 %v5772_v21  ;;  %v5784_v28 = vld [vmem:[#allocation5 + $0x194] ss:$48 sps:$4 sm:$0xff]   ;;  %v5789_v31 = vld [vmem:[#allocation5 + $0x190] ss:$48 sps:$4 sm:$0xff]  }
  0x6a   :  { %1906 = vmatprep.subr.bf16.mxu1 %v5724_v8  ;;  %v5742_v30 = vld [vmem:[#allocation5 + $0x3c4] ss:$48 sps:$4 sm:$0xff]   ;;  %v5744_v33 = vld [vmem:[#allocation5 + $0x3c0] ss:$48 sps:$4 sm:$0xff]  }
  0x6b   :  { %v5790_v32 = vld [vmem:[#allocation5 + $0x1f4] ss:$48 sps:$4 sm:$0xff]   ;;  %v5795_v35 = vld [vmem:[#allocation5 + $0x1f0] ss:$48 sps:$4 sm:$0xff]  }
  0x6c   :  { %2075 = vmatpush1.bf16.msra.mxu0 %v5777_v23  ;;  %v5745_v34 = vld [vmem:[#allocation5 + $0x424] ss:$48 sps:$4 sm:$0xff]   ;;  %v5747_v37 = vld [vmem:[#allocation5 + $0x420] ss:$48 sps:$4 sm:$0xff]  }
  0x6d   :  { %1907 = vmatpush1.bf16.msra.mxu1 %v5726_v9  ;;  %2076 = vmatprep.subr.bf16.mxu0 %v5778_v24  ;;  %v5796_v36 = vld [vmem:[#allocation5 + $0x254] ss:$48 sps:$4 sm:$0xff]   ;;  %v5801_v39 = vld [vmem:[#allocation5 + $0x250] ss:$48 sps:$4 sm:$0xff]  }
  0x6e   :  { %1908 = vmatprep.subr.bf16.mxu1 %v5727_v10  ;;  %v5748_v38 = vld [vmem:[#allocation5 + $0x484] ss:$48 sps:$4 sm:$0xff]   ;;  %v5750_v41 = vld [vmem:[#allocation5 + $0x480] ss:$48 sps:$4 sm:$0xff]  }
  0x6f   :  { %v5802_v40 = vld [vmem:[#allocation5 + $0x2b4] ss:$48 sps:$4 sm:$0xff]   ;;  %v5807_v43 = vld [vmem:[#allocation5 + $0x2b0] ss:$48 sps:$4 sm:$0xff]  }
  0x70   :  { %2077 = vmatpush1.bf16.msra.mxu0 %v5783_v27  ;;  %v5751_v42 = vld [vmem:[#allocation5 + $0x4e4] ss:$48 sps:$4 sm:$0xff]   ;;  %v5753_v45 = vld [vmem:[#allocation5 + $0x4e0] ss:$48 sps:$4 sm:$0xff]  }
  0x71   :  { %1909 = vmatpush1.bf16.msra.mxu1 %v5729_v11  ;;  %2078 = vmatprep.subr.bf16.mxu0 %v5784_v28  ;;  %v5808_v44 = vld [vmem:[#allocation5 + $0x314] ss:$48 sps:$4 sm:$0xff]   ;;  %v5813_v47 = vld [vmem:[#allocation5 + $0x310] ss:$48 sps:$4 sm:$0xff]  }
  0x72   :  { %1910 = vmatprep.subr.bf16.mxu1 %v5730_v12  ;;  %v5754_v46 = vld [vmem:[#allocation5 + $0x544] ss:$48 sps:$4 sm:$0xff]   ;;  %v5756_v49 = vld [vmem:[#allocation5 + $0x540] ss:$48 sps:$4 sm:$0xff]  }
  0x73   :  { %v5814_v48 = vld [vmem:[#allocation5 + $0x374] ss:$48 sps:$4 sm:$0xff]   ;;  %v5820_v51 = vld [vmem:[#allocation5 + $0x370] ss:$48 sps:$4 sm:$0xff]  }
  0x74   :  { %2079 = vmatpush1.bf16.msra.mxu0 %v5789_v31  ;;  %v5759_v50 = vld [vmem:[#allocation5 + $0x5a4] ss:$48 sps:$4 sm:$0xff]   ;;  %v5762_v53 = vld [vmem:[#allocation5 + $0x5a0] ss:$48 sps:$4 sm:$0xff]  }
  0x75   :  { %1911 = vmatpush1.bf16.msra.mxu1 %v5732_v14  ;;  %2080 = vmatprep.subr.bf16.mxu0 %v5790_v32  ;;  %v5821_v52 = vld [vmem:[#allocation5 + $0x3d4] ss:$48 sps:$4 sm:$0xff]   ;;  %v5826_v55 = vld [vmem:[#allocation5 + $0x3d0] ss:$48 sps:$4 sm:$0xff]  }
  0x76   :  { %1912 = vmatprep.subr.bf16.mxu1 %v5733_v15  ;;  %v5769_v54 = vld [vmem:[#allocation5 + $0x604] ss:$48 sps:$4 sm:$0xff]   ;;  %v5767_v58 = vld [vmem:[#allocation5 + $0x600] ss:$48 sps:$4 sm:$0xff]  }
  0x77   :  { %v5827_v56 = vld [vmem:[#allocation5 + $0x434] ss:$48 sps:$4 sm:$0xff]   ;;  %v5832_v60 = vld [vmem:[#allocation5 + $0x430] ss:$48 sps:$4 sm:$0xff]  }
  0x78   :  { %2081 = vmatpush1.bf16.msra.mxu0 %v5795_v35  ;;  %v6783_v57 = vld [vmem:[#allocation2] ss:$12 sps:$4 sm:$0xff]   ;;  %v5774_v62 = vld [vmem:[#allocation5 + $0x660] ss:$48 sps:$4 sm:$0xff]  }
  0x79   :  { %1913 = vmatpush1.bf16.msra.mxu1 %v5735_v19  ;;  %2082 = vmatprep.subr.bf16.mxu0 %v5796_v36  ;;  %v5776_v59 = vld [vmem:[#allocation5 + $0x664] ss:$48 sps:$4 sm:$0xff]   ;;  %v5838_v1 = vld [vmem:[#allocation5 + $0x490] ss:$48 sps:$4 sm:$0xff]  }
  0x7a   :  { %1914 = vmatprep.subr.bf16.mxu1 %v5736_v22  ;;  %v5833_v61 = vld [vmem:[#allocation5 + $0x494] ss:$48 sps:$4 sm:$0xff]   ;;  %v5780_v3 = vld [vmem:[#allocation5 + $0x6c0] ss:$48 sps:$4 sm:$0xff]  }
  0x7b   :  { %v5782_v0 = vld [vmem:[#allocation5 + $0x6c4] ss:$48 sps:$4 sm:$0xff]   ;;  %v5844_v5 = vld [vmem:[#allocation5 + $0x4f0] ss:$48 sps:$4 sm:$0xff]  }
  0x7c   :  { %2083 = vmatpush1.bf16.msra.mxu0 %v5801_v39  ;;  %v5839_v2 = vld [vmem:[#allocation5 + $0x4f4] ss:$48 sps:$4 sm:$0xff]   ;;  %v5786_v7 = vld [vmem:[#allocation5 + $0x720] ss:$48 sps:$4 sm:$0xff]  }
  0x7d   :  { %1915 = vmatpush1.bf16.msra.mxu1 %v5738_v25  ;;  %2084 = vmatprep.subr.bf16.mxu0 %v5802_v40  ;;  %v5788_v4 = vld [vmem:[#allocation5 + $0x724] ss:$48 sps:$4 sm:$0xff]   ;;  %v5850_v9 = vld [vmem:[#allocation5 + $0x550] ss:$48 sps:$4 sm:$0xff]   ;;  %v5819_v25 = vld [vmem:[#allocation5 + $0xc] ss:$48 sps:$4 sm:$0xff]  }
  0x7e   :  { %1916 = vmatprep.subr.bf16.mxu1 %v5739_v26  ;;  %v5845_v6 = vld [vmem:[#allocation5 + $0x554] ss:$48 sps:$4 sm:$0xff]   ;;  %v5792_v11 = vld [vmem:[#allocation5 + $0x780] ss:$48 sps:$4 sm:$0xff]  }
  0x7f   :  { %v5794_v8 = vld [vmem:[#allocation5 + $0x784] ss:$48 sps:$4 sm:$0xff]   ;;  %v5856_v13 = vld [vmem:[#allocation5 + $0x5b0] ss:$48 sps:$4 sm:$0xff]  }
  0x80   :  { %2085 = vmatpush1.bf16.msra.mxu0 %v5807_v43  ;;  %v5851_v10 = vld [vmem:[#allocation5 + $0x5b4] ss:$48 sps:$4 sm:$0xff]   ;;  %v5798_v15 = vld [vmem:[#allocation5 + $0x7e0] ss:$48 sps:$4 sm:$0xff]  }
  0x81   :  { %1917 = vmatpush1.bf16.msra.mxu1 %v5741_v29  ;;  %2086 = vmatprep.subr.bf16.mxu0 %v5808_v44  ;;  %v5800_v12 = vld [vmem:[#allocation5 + $0x7e4] ss:$48 sps:$4 sm:$0xff]   ;;  %v5857_v17 = vld [vmem:[#allocation5 + $0x610] ss:$48 sps:$4 sm:$0xff]   ;;  %v5817_v29 = vld [vmem:[#allocation5 + $0x8] ss:$48 sps:$4 sm:$0xff]  }
  0x82   :  { %1918 = vmatprep.subr.bf16.mxu1 %v5742_v30  ;;  %v5859_v14 = vld [vmem:[#allocation5 + $0x614] ss:$48 sps:$4 sm:$0xff]   ;;  %v5804_v20 = vld [vmem:[#allocation5 + $0x840] ss:$48 sps:$4 sm:$0xff]   ;;  %v5825_v30 = vld [vmem:[#allocation5 + $0x6c] ss:$48 sps:$4 sm:$0xff]  }
  0x83   :  { %v5806_v16 = vld [vmem:[#allocation5 + $0x844] ss:$48 sps:$4 sm:$0xff]   ;;  %v5863_v22 = vld [vmem:[#allocation5 + $0x670] ss:$48 sps:$4 sm:$0xff]  }
  0x84   :  { %2087 = vmatpush1.bf16.msra.mxu0 %v5813_v47  ;;  %v5865_v19 = vld [vmem:[#allocation5 + $0x674] ss:$48 sps:$4 sm:$0xff]   ;;  %v5810_v24 = vld [vmem:[#allocation5 + $0x8a0] ss:$48 sps:$4 sm:$0xff]  }
  0x85   :  { %1919 = vmatpush1.bf16.msra.mxu1 %v5744_v33  ;;  %2088 = vmatprep.subr.bf16.mxu0 %v5814_v48  ;;  %v5812_v21 = vld [vmem:[#allocation5 + $0x8a4] ss:$48 sps:$4 sm:$0xff]   ;;  %v5869_v26 = vld [vmem:[#allocation5 + $0x6d0] ss:$48 sps:$4 sm:$0xff]   ;;  %v5823_v33 = vld [vmem:[#allocation5 + $0x68] ss:$48 sps:$4 sm:$0xff]  }
  0x86   :  { %1920 = vmatprep.subr.bf16.mxu1 %v5745_v34  ;;  %v5871_v23 = vld [vmem:[#allocation5 + $0x6d4] ss:$48 sps:$4 sm:$0xff]   ;;  %v6789_v28 = vld [vmem:[#allocation2 + $0x8] ss:$12 sps:$4 sm:$0xff]  }
  0x87   :  { %v5877_v27 = vld [vmem:[#allocation5 + $0x734] ss:$48 sps:$4 sm:$0xff]   ;;  %v5875_v31 = vld [vmem:[#allocation5 + $0x730] ss:$48 sps:$4 sm:$0xff]   ;;  %v5831_v34 = vld [vmem:[#allocation5 + $0xcc] ss:$48 sps:$4 sm:$0xff]  }
  0x88   :  { %2089 = vmatpush1.bf16.msra.mxu0 %v5820_v51  ;;  %v5883_v32 = vld [vmem:[#allocation5 + $0x794] ss:$48 sps:$4 sm:$0xff]   ;;  %v5881_v35 = vld [vmem:[#allocation5 + $0x790] ss:$48 sps:$4 sm:$0xff]  }
  0x89   :  { %1921 = vmatpush1.bf16.msra.mxu1 %v5747_v37  ;;  %2090 = vmatprep.subr.bf16.mxu0 %v5821_v52  ;;  %v5889_v36 = vld [vmem:[#allocation5 + $0x7f4] ss:$48 sps:$4 sm:$0xff]   ;;  %v5829_v37 = vld [vmem:[#allocation5 + $0xc8] ss:$48 sps:$4 sm:$0xff]   ;;  %v5887_v39 = vld [vmem:[#allocation5 + $0x7f0] ss:$48 sps:$4 sm:$0xff]  }
  0x8a   :  { %1922 = vmatprep.subr.bf16.mxu1 %v5748_v38  ;;  %v5837_v38 = vld [vmem:[#allocation5 + $0x12c] ss:$48 sps:$4 sm:$0xff]   ;;  %v5895_v40 = vld [vmem:[#allocation5 + $0x854] ss:$48 sps:$4 sm:$0xff]   ;;  %v5893_v43 = vld [vmem:[#allocation5 + $0x850] ss:$48 sps:$4 sm:$0xff]  }
  0x8b   :  { %v5901_v44 = vld [vmem:[#allocation5 + $0x8b4] ss:$48 sps:$4 sm:$0xff]   ;;  %v5899_v47 = vld [vmem:[#allocation5 + $0x8b0] ss:$48 sps:$4 sm:$0xff]  }
  0x8c   :  { %2091 = vmatpush1.bf16.msra.mxu0 %v5826_v55  ;;  %v5907_v48 = vld [vmem:[#allocation5 + $0x24] ss:$48 sps:$4 sm:$0xff]   ;;  %v5905_v51 = vld [vmem:[#allocation5 + $0x20] ss:$48 sps:$4 sm:$0xff]  }
  0x8d   :  { %1923 = vmatpush1.bf16.msra.mxu1 %v5750_v41  ;;  %2092 = vmatprep.subr.bf16.mxu0 %v5827_v56  ;;  %v5835_v41 = vld [vmem:[#allocation5 + $0x128] ss:$48 sps:$4 sm:$0xff]   ;;  %v5913_v52 = vld [vmem:[#allocation5 + $0x84] ss:$48 sps:$4 sm:$0xff]   ;;  %v5911_v55 = vld [vmem:[#allocation5 + $0x80] ss:$48 sps:$4 sm:$0xff]  }
  0x8e   :  { %1924 = vmatprep.subr.bf16.mxu1 %v5751_v42  ;;  %v5843_v42 = vld [vmem:[#allocation5 + $0x18c] ss:$48 sps:$4 sm:$0xff]   ;;  %v5919_v56 = vld [vmem:[#allocation5 + $0xe4] ss:$48 sps:$4 sm:$0xff]  }
  0x90   :  { %2093 = vmatpush1.bf16.msra.mxu0 %v5832_v60  ;;  %v5917_v60 = vld [vmem:[#allocation5 + $0xe0] ss:$48 sps:$4 sm:$0xff]  }
  0x91   :  { %1925 = vmatpush1.bf16.msra.mxu1 %v5753_v45  ;;  %2094 = vmatprep.subr.bf16.mxu0 %v5833_v61  ;;  %v5841_v45 = vld [vmem:[#allocation5 + $0x188] ss:$48 sps:$4 sm:$0xff]   ;;  %v5925_v61 = vld [vmem:[#allocation5 + $0x144] ss:$48 sps:$4 sm:$0xff]  }
  0x92   :  { %1926 = vmatprep.subr.bf16.mxu1 %v5754_v46  ;;  %v5849_v46 = vld [vmem:[#allocation5 + $0x1ec] ss:$48 sps:$4 sm:$0xff]  }
  0x94   :  { %2095 = vmatpush1.bf16.msra.mxu0 %v5838_v1  ;;  %v5923_v1 = vld [vmem:[#allocation5 + $0x140] ss:$48 sps:$4 sm:$0xff]  }
  0x95   :  { %1927 = vmatpush1.bf16.msra.mxu1 %v5756_v49  ;;  %2096 = vmatprep.subr.bf16.mxu0 %v5839_v2  ;;  %v5847_v49 = vld [vmem:[#allocation5 + $0x1e8] ss:$48 sps:$4 sm:$0xff]   ;;  %v5931_v2 = vld [vmem:[#allocation5 + $0x1a4] ss:$48 sps:$4 sm:$0xff]  }
  0x96   :  { %1928 = vmatprep.subr.bf16.mxu1 %v5759_v50  ;;  %v5855_v50 = vld [vmem:[#allocation5 + $0x24c] ss:$48 sps:$4 sm:$0xff]  }
  0x98   :  { %2097 = vmatpush1.bf16.msra.mxu0 %v5844_v5  ;;  %v5937_v5 = vld [vmem:[#allocation5 + $0x204] ss:$48 sps:$4 sm:$0xff]  }
  0x99   :  { %1929 = vmatpush1.bf16.msra.mxu1 %v5762_v53  ;;  %2098 = vmatprep.subr.bf16.mxu0 %v5845_v6  ;;  %v5853_v53 = vld [vmem:[#allocation5 + $0x248] ss:$48 sps:$4 sm:$0xff]  }
  0x9a   :  { %1941 = vmatprep.subr.bf16.mxu1 %v5769_v54  ;;  %v5862_v54 = vld [vmem:[#allocation5 + $0x2ac] ss:$48 sps:$4 sm:$0xff]   ;;  %v5878_v6 = vld [vmem:[#allocation5 + $0x3c8] ss:$48 sps:$4 sm:$0xff]  }
  0x9c   :  { %1931 = vmatmul.mubr.bf16.vlgmr.msra.gmra.mrb[0].mxu1 %v6783_v57  ;;  %2099 = vmatpush1.bf16.msra.mxu0 %v5850_v9  ;;  %v5943_v9 = vld [vmem:[#allocation5 + $0x264] ss:$48 sps:$4 sm:$0xff]  }
  0x9d   :  { %1942 = vmatpush1.bf16.msra.mxu1 %v5767_v58  ;;  %1973 = vmatprep.mubr.bf16.mxu1 %v6685_v63  ;;  %v5860_v58 = vld [vmem:[#allocation5 + $0x2a8] ss:$48 sps:$4 sm:$0xff]  }
  0x9e   :  { %1943 = vmatprep.subr.bf16.mxu1 %v5776_v59  ;;  %2100 = vmatprep.subr.bf16.mxu0 %v5851_v10  ;;  %v5868_v59 = vld [vmem:[#allocation5 + $0x30c] ss:$48 sps:$4 sm:$0xff]   ;;  %v5884_v10 = vld [vmem:[#allocation5 + $0x428] ss:$48 sps:$4 sm:$0xff]  }
  0xa0   :  { %2101 = vmatpush1.bf16.msra.mxu0 %v5856_v13  ;;  %v5949_v13 = vld [vmem:[#allocation5 + $0x2c4] ss:$48 sps:$4 sm:$0xff]  }
  0xa1   :  { %1944 = vmatpush1.bf16.msra.mxu1 %v5774_v62  ;;  %2113 = vmatprep.subr.bf16.mxu0 %v5859_v14  ;;  %v5866_v62 = vld [vmem:[#allocation5 + $0x308] ss:$48 sps:$4 sm:$0xff]  }
  0xa2   :  { %1945 = vmatprep.subr.bf16.mxu1 %v5782_v0  ;;  %v5874_v0 = vld [vmem:[#allocation5 + $0x36c] ss:$48 sps:$4 sm:$0xff]   ;;  %v5890_v14 = vld [vmem:[#allocation5 + $0x488] ss:$48 sps:$4 sm:$0xff]  }
  0xa3   :  { %2103 = vmatmul.mubr.bf16.vlgmr.msra.gmra.mrb[0].mxu0 %v6783_v57 }
  0xa4   :  { %2114 = vmatpush1.bf16.msra.mxu0 %v5857_v17  ;;  %2145 = vmatprep.mubr.bf16.mxu0 %v6685_v63  ;;  %v5955_v17 = vld [vmem:[#allocation5 + $0x324] ss:$48 sps:$4 sm:$0xff]  }
  0xa5   :  { %1946 = vmatpush1.bf16.msra.mxu1 %v5780_v3  ;;  %2115 = vmatprep.subr.bf16.mxu0 %v5865_v19  ;;  %v5872_v3 = vld [vmem:[#allocation5 + $0x368] ss:$48 sps:$4 sm:$0xff]  }
  0xa6   :  { %1947 = vmatprep.subr.bf16.mxu1 %v5788_v4  ;;  %v5929_v4 = vld [vmem:[#allocation5 + $0x1a0] ss:$48 sps:$4 sm:$0xff]   ;;  %v5896_v19 = vld [vmem:[#allocation5 + $0x4e8] ss:$48 sps:$4 sm:$0xff]  }
  0xa8   :  { %2116 = vmatpush1.bf16.msra.mxu0 %v5863_v22  ;;  %v5961_v22 = vld [vmem:[#allocation5 + $0x384] ss:$48 sps:$4 sm:$0xff]  }
  0xa9   :  { %1948 = vmatpush1.bf16.msra.mxu1 %v5786_v7  ;;  %2117 = vmatprep.subr.bf16.mxu0 %v5871_v23  ;;  %v5886_v7 = vld [vmem:[#allocation5 + $0x42c] ss:$48 sps:$4 sm:$0xff]   ;;  %v5902_v23 = vld [vmem:[#allocation5 + $0x548] ss:$48 sps:$4 sm:$0xff]  }
  0xaa   :  { %1949 = vmatprep.subr.bf16.mxu1 %v5794_v8  ;;  %v5935_v8 = vld [vmem:[#allocation5 + $0x200] ss:$48 sps:$4 sm:$0xff]  }
  0xac   :  { %2118 = vmatpush1.bf16.msra.mxu0 %v5869_v26  ;;  %v5967_v26 = vld [vmem:[#allocation5 + $0x3e4] ss:$48 sps:$4 sm:$0xff]  }
  0xad   :  { %1950 = vmatpush1.bf16.msra.mxu1 %v5792_v11  ;;  %2119 = vmatprep.subr.bf16.mxu0 %v5877_v27  ;;  %v5892_v11 = vld [vmem:[#allocation5 + $0x48c] ss:$48 sps:$4 sm:$0xff]   ;;  %v5908_v27 = vld [vmem:[#allocation5 + $0x5a8] ss:$48 sps:$4 sm:$0xff]  }
  0xae   :  { %1951 = vmatprep.subr.bf16.mxu1 %v5800_v12  ;;  %v5941_v12 = vld [vmem:[#allocation5 + $0x260] ss:$48 sps:$4 sm:$0xff]  }
  0xb0   :  { %2120 = vmatpush1.bf16.msra.mxu0 %v5875_v31  ;;  %v5973_v31 = vld [vmem:[#allocation5 + $0x444] ss:$48 sps:$4 sm:$0xff]  }
  0xb1   :  { %1952 = vmatpush1.bf16.msra.mxu1 %v5798_v15  ;;  %2121 = vmatprep.subr.bf16.mxu0 %v5883_v32  ;;  %v5898_v15 = vld [vmem:[#allocation5 + $0x4ec] ss:$48 sps:$4 sm:$0xff]   ;;  %v5914_v32 = vld [vmem:[#allocation5 + $0x608] ss:$48 sps:$4 sm:$0xff]  }
  0xb2   :  { %1953 = vmatprep.subr.bf16.mxu1 %v5806_v16  ;;  %v5947_v16 = vld [vmem:[#allocation5 + $0x2c0] ss:$48 sps:$4 sm:$0xff]  }
  0xb4   :  { %2122 = vmatpush1.bf16.msra.mxu0 %v5881_v35  ;;  %v5979_v35 = vld [vmem:[#allocation5 + $0x4a4] ss:$48 sps:$4 sm:$0xff]  }
  0xb5   :  { %1954 = vmatpush1.bf16.msra.mxu1 %v5804_v20  ;;  %2123 = vmatprep.subr.bf16.mxu0 %v5889_v36  ;;  %v5904_v20 = vld [vmem:[#allocation5 + $0x54c] ss:$48 sps:$4 sm:$0xff]   ;;  %v5920_v36 = vld [vmem:[#allocation5 + $0x668] ss:$48 sps:$4 sm:$0xff]  }
  0xb6   :  { %1955 = vmatprep.subr.bf16.mxu1 %v5812_v21  ;;  %v5953_v21 = vld [vmem:[#allocation5 + $0x320] ss:$48 sps:$4 sm:$0xff]  }
  0xb8   :  { %2124 = vmatpush1.bf16.msra.mxu0 %v5887_v39  ;;  %v5985_v39 = vld [vmem:[#allocation5 + $0x504] ss:$48 sps:$4 sm:$0xff]  }
  0xb9   :  { %1956 = vmatpush1.bf16.msra.mxu1 %v5810_v24  ;;  %2125 = vmatprep.subr.bf16.mxu0 %v5895_v40  ;;  %v5910_v24 = vld [vmem:[#allocation5 + $0x5ac] ss:$48 sps:$4 sm:$0xff]   ;;  %v5926_v40 = vld [vmem:[#allocation5 + $0x6c8] ss:$48 sps:$4 sm:$0xff]  }
  0xba   :  { %1984 = vmatprep.subr.bf16.mxu1 %v5819_v25  ;;  %v5959_v25 = vld [vmem:[#allocation5 + $0x380] ss:$48 sps:$4 sm:$0xff]  }
  0xbc   :  { %1974 = vmatmul.mubr.bf16.vlgmr.msra.gmra.mrb[0].mxu1 %v6789_v28  ;;  %2126 = vmatpush1.bf16.msra.mxu0 %v5893_v43  ;;  %v5991_v43 = vld [vmem:[#allocation5 + $0x564] ss:$48 sps:$4 sm:$0xff]  }
  0xbd   :  { %1985 = vmatpush1.bf16.msra.mxu1 %v5817_v29  ;;  %2016 = vmatprep.mubr.bf16.mxu1 %v6779_v18  ;;  %v5916_v29 = vld [vmem:[#allocation5 + $0x60c] ss:$48 sps:$4 sm:$0xff]  }
  0xbe   :  { %1986 = vmatprep.subr.bf16.mxu1 %v5825_v30  ;;  %2127 = vmatprep.subr.bf16.mxu0 %v5901_v44  ;;  %v5965_v30 = vld [vmem:[#allocation5 + $0x3e0] ss:$48 sps:$4 sm:$0xff]   ;;  %v5932_v44 = vld [vmem:[#allocation5 + $0x728] ss:$48 sps:$4 sm:$0xff]  }
  0xc0   :  { %2128 = vmatpush1.bf16.msra.mxu0 %v5899_v47  ;;  %v5997_v47 = vld [vmem:[#allocation5 + $0x5c4] ss:$48 sps:$4 sm:$0xff]  }
  0xc1   :  { %1987 = vmatpush1.bf16.msra.mxu1 %v5823_v33  ;;  %2242 = vmatprep.subr.bf16.mxu0 %v5907_v48  ;;  %v5922_v33 = vld [vmem:[#allocation5 + $0x66c] ss:$48 sps:$4 sm:$0xff]   ;;  %v5938_v48 = vld [vmem:[#allocation5 + $0x788] ss:$48 sps:$4 sm:$0xff]  }
  0xc2   :  { %1988 = vmatprep.subr.bf16.mxu1 %v5831_v34  ;;  %v5971_v34 = vld [vmem:[#allocation5 + $0x440] ss:$48 sps:$4 sm:$0xff]  }
  0xc3   :  { %2146 = vmatmul.mubr.bf16.vlgmr.msra.gmra.mrb[0].mxu0 %v6789_v28 }
  0xc4   :  { %2243 = vmatpush1.bf16.msra.mxu0 %v5905_v51  ;;  %2274 = vmatprep.mubr.bf16.mxu0 %v6779_v18  ;;  %v5880_v18 = vld [vmem:[#allocation5 + $0x3cc] ss:$48 sps:$4 sm:$0xff]   ;;  %v6003_v51 = vld [vmem:[#allocation5 + $0x624] ss:$48 sps:$4 sm:$0xff]  }
  0xc5   :  { %1989 = vmatpush1.bf16.msra.mxu1 %v5829_v37  ;;  %2244 = vmatprep.subr.bf16.mxu0 %v5913_v52  ;;  %v5928_v37 = vld [vmem:[#allocation5 + $0x6cc] ss:$48 sps:$4 sm:$0xff]   ;;  %v5944_v52 = vld [vmem:[#allocation5 + $0x7e8] ss:$48 sps:$4 sm:$0xff]  }
  0xc6   :  { %1990 = vmatprep.subr.bf16.mxu1 %v5837_v38  ;;  %v5977_v38 = vld [vmem:[#allocation5 + $0x4a0] ss:$48 sps:$4 sm:$0xff]  }
  0xc8   :  { %2245 = vmatpush1.bf16.msra.mxu0 %v5911_v55  ;;  %v6009_v55 = vld [vmem:[#allocation5 + $0x684] ss:$48 sps:$4 sm:$0xff]  }
  0xc9   :  { %1991 = vmatpush1.bf16.msra.mxu1 %v5835_v41  ;;  %2246 = vmatprep.subr.bf16.mxu0 %v5919_v56  ;;  %v5934_v41 = vld [vmem:[#allocation5 + $0x72c] ss:$48 sps:$4 sm:$0xff]   ;;  %v5950_v56 = vld [vmem:[#allocation5 + $0x848] ss:$48 sps:$4 sm:$0xff]  }
  0xca   :  { %1992 = vmatprep.subr.bf16.mxu1 %v5843_v42  ;;  %v5983_v42 = vld [vmem:[#allocation5 + $0x500] ss:$48 sps:$4 sm:$0xff]  }
  0xcc   :  { %2247 = vmatpush1.bf16.msra.mxu0 %v5917_v60  ;;  %v6015_v60 = vld [vmem:[#allocation5 + $0x6e4] ss:$48 sps:$4 sm:$0xff]  }
  0xcd   :  { %1993 = vmatpush1.bf16.msra.mxu1 %v5841_v45  ;;  %2248 = vmatprep.subr.bf16.mxu0 %v5925_v61  ;;  %v5940_v45 = vld [vmem:[#allocation5 + $0x78c] ss:$48 sps:$4 sm:$0xff]   ;;  %v5956_v61 = vld [vmem:[#allocation5 + $0x8a8] ss:$48 sps:$4 sm:$0xff]  }
  0xce   :  { %1994 = vmatprep.subr.bf16.mxu1 %v5849_v46  ;;  %v5989_v46 = vld [vmem:[#allocation5 + $0x560] ss:$48 sps:$4 sm:$0xff]  }
  0xd0   :  { %2249 = vmatpush1.bf16.msra.mxu0 %v5923_v1  ;;  %v6021_v1 = vld [vmem:[#allocation5 + $0x744] ss:$48 sps:$4 sm:$0xff]  }
  0xd1   :  { %1995 = vmatpush1.bf16.msra.mxu1 %v5847_v49  ;;  %2250 = vmatprep.subr.bf16.mxu0 %v5931_v2  ;;  %v5946_v49 = vld [vmem:[#allocation5 + $0x7ec] ss:$48 sps:$4 sm:$0xff]   ;;  %v5962_v2 = vld [vmem:[#allocation5 + $0x18] ss:$48 sps:$4 sm:$0xff]  }
  0xd2   :  { %1996 = vmatprep.subr.bf16.mxu1 %v5855_v50  ;;  %v5995_v50 = vld [vmem:[#allocation5 + $0x5c0] ss:$48 sps:$4 sm:$0xff]  }
  0xd4   :  { %2251 = vmatpush1.bf16.msra.mxu0 %v5929_v4  ;;  %v5968_v4 = vld [vmem:[#allocation5 + $0x78] ss:$48 sps:$4 sm:$0xff]  }
  0xd5   :  { %1997 = vmatpush1.bf16.msra.mxu1 %v5853_v53  ;;  %2252 = vmatprep.subr.bf16.mxu0 %v5937_v5  ;;  %v5952_v53 = vld [vmem:[#allocation5 + $0x84c] ss:$48 sps:$4 sm:$0xff]  }
  0xd6   :  { %1998 = vmatprep.subr.bf16.mxu1 %v5862_v54  ;;  %v6001_v54 = vld [vmem:[#allocation5 + $0x620] ss:$48 sps:$4 sm:$0xff]   ;;  %v5976_v5 = vld [vmem:[#allocation5 + $0xdc] ss:$48 sps:$4 sm:$0xff]  }
  0xd8   :  { %2253 = vmatpush1.bf16.msra.mxu0 %v5935_v8  ;;  %v5974_v8 = vld [vmem:[#allocation5 + $0xd8] ss:$48 sps:$4 sm:$0xff]  }
  0xd9   :  { %1999 = vmatpush1.bf16.msra.mxu1 %v5860_v58  ;;  %2254 = vmatprep.subr.bf16.mxu0 %v5943_v9  ;;  %v5958_v58 = vld [vmem:[#allocation5 + $0x8ac] ss:$48 sps:$4 sm:$0xff]   ;;  %v6033_v9 = vld [vmem:[#allocation5 + $0x804] ss:$48 sps:$4 sm:$0xff]  }
  0xda   :  { %2000 = vmatprep.subr.bf16.mxu1 %v5868_v59  ;;  %v6007_v59 = vld [vmem:[#allocation5 + $0x680] ss:$48 sps:$4 sm:$0xff]  }
  0xdc   :  { %2255 = vmatpush1.bf16.msra.mxu0 %v5941_v12  ;;  %v6039_v12 = vld [vmem:[#allocation5 + $0x864] ss:$48 sps:$4 sm:$0xff]  }
  0xdd   :  { %2001 = vmatpush1.bf16.msra.mxu1 %v5866_v62  ;;  %2256 = vmatprep.subr.bf16.mxu0 %v5949_v13  ;;  %v5964_v62 = vld [vmem:[#allocation5 + $0x1c] ss:$48 sps:$4 sm:$0xff]   ;;  %v5980_v13 = vld [vmem:[#allocation5 + $0x138] ss:$48 sps:$4 sm:$0xff]  }
  0xde   :  { %2002 = vmatprep.subr.bf16.mxu1 %v5874_v0  ;;  %v6013_v0 = vld [vmem:[#allocation5 + $0x6e0] ss:$48 sps:$4 sm:$0xff]  }
  0xe0   :  { %2257 = vmatpush1.bf16.msra.mxu0 %v5947_v16  ;;  %v6045_v16 = vld [vmem:[#allocation5 + $0x8c4] ss:$48 sps:$4 sm:$0xff]  }
  0xe1   :  { %2003 = vmatpush1.bf16.msra.mxu1 %v5872_v3  ;;  %2258 = vmatprep.subr.bf16.mxu0 %v5955_v17  ;;  %v5970_v3 = vld [vmem:[#allocation5 + $0x7c] ss:$48 sps:$4 sm:$0xff]   ;;  %v5986_v17 = vld [vmem:[#allocation5 + $0x198] ss:$48 sps:$4 sm:$0xff]  }
  0xe2   :  { %2004 = vmatprep.subr.bf16.mxu1 %v5880_v18  ;;  %v6027_v18 = vld [vmem:[#allocation5 + $0x7a4] ss:$48 sps:$4 sm:$0xff]  }
  0xe4   :  { %2259 = vmatpush1.bf16.msra.mxu0 %v5953_v21  ;;  %v6054_v21 = vld [vmem:[#allocation8 + $0x4] ss:$12 sps:$4 sm:$0xff]  }
  0xe5   :  { %2005 = vmatpush1.bf16.msra.mxu1 %v5878_v6  ;;  %2260 = vmatprep.subr.bf16.mxu0 %v5961_v22  ;;  %v6800_v6 = vld [vmem:[#allocation2 + $0x4] ss:$12 sps:$4 sm:$0xff]  }
  0xe6   :  { %2006 = vmatprep.subr.bf16.mxu1 %v5886_v7  ;;  %v6025_v7 = vld [vmem:[#allocation5 + $0x7a0] ss:$48 sps:$4 sm:$0xff]   ;;  %v5992_v22 = vld [vmem:[#allocation5 + $0x1f8] ss:$48 sps:$4 sm:$0xff]  }
  0xe8   :  { %2261 = vmatpush1.bf16.msra.mxu0 %v5959_v25  ;;  %v6060_v25 = vld [vmem:[#allocation8 + $0x1c] ss:$12 sps:$4 sm:$0xff]  }
  0xe9   :  { %2007 = vmatpush1.bf16.msra.mxu1 %v5884_v10  ;;  %2262 = vmatprep.subr.bf16.mxu0 %v5967_v26  ;;  %v5982_v10 = vld [vmem:[#allocation5 + $0x13c] ss:$48 sps:$4 sm:$0xff]   ;;  %v5998_v26 = vld [vmem:[#allocation5 + $0x258] ss:$48 sps:$4 sm:$0xff]  }
  0xea   :  { %2008 = vmatprep.subr.bf16.mxu1 %v5892_v11  ;;  %v6031_v11 = vld [vmem:[#allocation5 + $0x800] ss:$48 sps:$4 sm:$0xff]  }
  0xec   :  { %2263 = vmatpush1.bf16.msra.mxu0 %v5965_v30  ;;  %v6066_v30 = vld [vmem:[#allocation8 + $0x34] ss:$12 sps:$4 sm:$0xff]  }
  0xed   :  { %2009 = vmatpush1.bf16.msra.mxu1 %v5890_v14  ;;  %2264 = vmatprep.subr.bf16.mxu0 %v5973_v31  ;;  %v5988_v14 = vld [vmem:[#allocation5 + $0x19c] ss:$48 sps:$4 sm:$0xff]   ;;  %v6004_v31 = vld [vmem:[#allocation5 + $0x2b8] ss:$48 sps:$4 sm:$0xff]  }
  0xee   :  { %2010 = vmatprep.subr.bf16.mxu1 %v5898_v15  ;;  %v6037_v15 = vld [vmem:[#allocation5 + $0x860] ss:$48 sps:$4 sm:$0xff]  }
  0xf0   :  { %2265 = vmatpush1.bf16.msra.mxu0 %v5971_v34  ;;  %v6072_v34 = vld [vmem:[#allocation8 + $0x4c] ss:$12 sps:$4 sm:$0xff]  }
  0xf1   :  { %2011 = vmatpush1.bf16.msra.mxu1 %v5896_v19  ;;  %2266 = vmatprep.subr.bf16.mxu0 %v5979_v35  ;;  %v5994_v19 = vld [vmem:[#allocation5 + $0x1fc] ss:$48 sps:$4 sm:$0xff]   ;;  %v6010_v35 = vld [vmem:[#allocation5 + $0x318] ss:$48 sps:$4 sm:$0xff]  }
  0xf2   :  { %2012 = vmatprep.subr.bf16.mxu1 %v5904_v20  ;;  %v6043_v20 = vld [vmem:[#allocation5 + $0x8c0] ss:$48 sps:$4 sm:$0xff]  }
  0xf4   :  { %2267 = vmatpush1.bf16.msra.mxu0 %v5977_v38  ;;  %v6016_v38 = vld [vmem:[#allocation5 + $0x378] ss:$48 sps:$4 sm:$0xff]  }
  0xf5   :  { %2013 = vmatpush1.bf16.msra.mxu1 %v5902_v23  ;;  %2268 = vmatprep.subr.bf16.mxu0 %v5985_v39  ;;  %v6000_v23 = vld [vmem:[#allocation5 + $0x25c] ss:$48 sps:$4 sm:$0xff]  }
  0xf6   :  { %2014 = vmatprep.subr.bf16.mxu1 %v5910_v24  ;;  %v6052_v24 = vld [vmem:[#allocation8] ss:$12 sps:$4 sm:$0xff]  }
  0xf7   :  { %v6024_v39 = vld [vmem:[#allocation5 + $0x3dc] ss:$48 sps:$4 sm:$0xff]  }
  0xf8   :  { %2269 = vmatpush1.bf16.msra.mxu0 %v5983_v42  ;;  %v6022_v42 = vld [vmem:[#allocation5 + $0x3d8] ss:$48 sps:$4 sm:$0xff]  }
  0xf9   :  { %2015 = vmatpush1.bf16.msra.mxu1 %v5908_v27  ;;  %2270 = vmatprep.subr.bf16.mxu0 %v5991_v43  ;;  %v6006_v27 = vld [vmem:[#allocation5 + $0x2bc] ss:$48 sps:$4 sm:$0xff]  }
  0xfa   :  { %2027 = vmatprep.subr.bf16.mxu1 %v5916_v29  ;;  %v6058_v29 = vld [vmem:[#allocation8 + $0x18] ss:$12 sps:$4 sm:$0xff]   ;;  %v6030_v43 = vld [vmem:[#allocation5 + $0x43c] ss:$48 sps:$4 sm:$0xff]  }
  0xfc   :  { %2017 = vmatmul.mubr.bf16.vlgmr.msra.gmra.mrb[4].mxu1 %v6783_v57  ;;  %2271 = vmatpush1.bf16.msra.mxu0 %v5989_v46  ;;  %v6028_v46 = vld [vmem:[#allocation5 + $0x438] ss:$48 sps:$4 sm:$0xff]  }
  0xfd   :  { %2028 = vmatpush1.bf16.msra.mxu1 %v5914_v32  ;;  %2059 = vmatprep.mubr.bf16.mxu1 %v6685_v63  ;;  %v6012_v32 = vld [vmem:[#allocation5 + $0x31c] ss:$48 sps:$4 sm:$0xff]  }
  0xfe   :  { %2029 = vmatprep.subr.bf16.mxu1 %v5922_v33  ;;  %2272 = vmatprep.subr.bf16.mxu0 %v5997_v47  ;;  %v6064_v33 = vld [vmem:[#allocation8 + $0x30] ss:$12 sps:$4 sm:$0xff]  }
  0xff   :  { %v6036_v47 = vld [vmem:[#allocation5 + $0x49c] ss:$48 sps:$4 sm:$0xff]  }
 0x100   :  { %2273 = vmatpush1.bf16.msra.mxu0 %v5995_v50  ;;  %v6034_v50 = vld [vmem:[#allocation5 + $0x498] ss:$48 sps:$4 sm:$0xff]  }
 0x101   :  { %2030 = vmatpush1.bf16.msra.mxu1 %v5920_v36  ;;  %2285 = vmatprep.subr.bf16.mxu0 %v6003_v51  ;;  %v6018_v36 = vld [vmem:[#allocation5 + $0x37c] ss:$48 sps:$4 sm:$0xff]  }
 0x102   :  { %2031 = vmatprep.subr.bf16.mxu1 %v5928_v37  ;;  %v6070_v37 = vld [vmem:[#allocation8 + $0x48] ss:$12 sps:$4 sm:$0xff]   ;;  %v6042_v51 = vld [vmem:[#allocation5 + $0x4fc] ss:$48 sps:$4 sm:$0xff]  }
 0x103   :  { %2275 = vmatmul.mubr.bf16.vlgmr.msra.gmra.mrb[4].mxu0 %v6783_v57  ;;  %v6019_v57 = vld [vmem:[#allocation5 + $0x740] ss:$48 sps:$4 sm:$0xff]  }
 0x104   :  { %2286 = vmatpush1.bf16.msra.mxu0 %v6001_v54  ;;  %2317 = vmatprep.mubr.bf16.mxu0 %v6685_v63  ;;  %v6040_v54 = vld [vmem:[#allocation5 + $0x4f8] ss:$48 sps:$4 sm:$0xff]  }
 0x105   :  { %2032 = vmatpush1.bf16.msra.mxu1 %v5926_v40  ;;  %2287 = vmatprep.subr.bf16.mxu0 %v6009_v55  ;;  %v6076_v40 = vld [vmem:[#allocation8 + $0x60] ss:$12 sps:$4 sm:$0xff]  }
 0x106   :  { %2033 = vmatprep.subr.bf16.mxu1 %v5934_v41  ;;  %v6084_v41 = vld [vmem:[#allocation8 + $0x7c] ss:$12 sps:$4 sm:$0xff]   ;;  %v6048_v55 = vld [vmem:[#allocation5 + $0x55c] ss:$48 sps:$4 sm:$0xff]  }
 0x108   :  { %2288 = vmatpush1.bf16.msra.mxu0 %v6007_v59  ;;  %v6046_v59 = vld [vmem:[#allocation5 + $0x558] ss:$48 sps:$4 sm:$0xff]  }
 0x109   :  { %2034 = vmatpush1.bf16.msra.mxu1 %v5932_v44  ;;  %2289 = vmatprep.subr.bf16.mxu0 %v6015_v60  ;;  %v6082_v44 = vld [vmem:[#allocation8 + $0x78] ss:$12 sps:$4 sm:$0xff]   ;;  %v6051_v60 = vld [vmem:[#allocation5 + $0x5bc] ss:$48 sps:$4 sm:$0xff]  }
 0x10a   :  { %2035 = vmatprep.subr.bf16.mxu1 %v5940_v45  ;;  %v6090_v45 = vld [vmem:[#allocation8 + $0x94] ss:$12 sps:$4 sm:$0xff]  }
 0x10c   :  { %2290 = vmatpush1.bf16.msra.mxu0 %v6013_v0  ;;  %v6049_v0 = vld [vmem:[#allocation5 + $0x5b8] ss:$48 sps:$4 sm:$0xff]  }
 0x10d   :  { %2036 = vmatpush1.bf16.msra.mxu1 %v5938_v48  ;;  %2291 = vmatprep.subr.bf16.mxu0 %v6021_v1  ;;  %v6088_v48 = vld [vmem:[#allocation8 + $0x90] ss:$12 sps:$4 sm:$0xff]  }
 0x10e   :  { %2037 = vmatprep.subr.bf16.mxu1 %v5946_v49  ;;  %v6096_v49 = vld [vmem:[#allocation8 + $0xac] ss:$12 sps:$4 sm:$0xff]   ;;  %v6057_v1 = vld [vmem:[#allocation5 + $0x61c] ss:$48 sps:$4 sm:$0xff]  }
 0x110   :  { %2292 = vmatpush1.bf16.msra.mxu0 %v6019_v57  ;;  %v6120_v57 = vld [vmem:[#allocation8 + $0x10c] ss:$12 sps:$4 sm:$0xff]  }
 0x111   :  { %2038 = vmatpush1.bf16.msra.mxu1 %v5944_v52  ;;  %2293 = vmatprep.subr.bf16.mxu0 %v6027_v18  ;;  %v6094_v52 = vld [vmem:[#allocation8 + $0xa8] ss:$12 sps:$4 sm:$0xff]   ;;  %v6063_v18 = vld [vmem:[#allocation5 + $0x67c] ss:$48 sps:$4 sm:$0xff]  }
 0x112   :  { %2039 = vmatprep.subr.bf16.mxu1 %v5952_v53  ;;  %v6102_v53 = vld [vmem:[#allocation8 + $0xc4] ss:$12 sps:$4 sm:$0xff]  }
 0x114   :  { %2294 = vmatpush1.bf16.msra.mxu0 %v6025_v7  ;;  %v6804_v7 = vld [vmem:[#allocation2] ss:$12 sps:$4 sm:$0xff]  }
 0x115   :  { %2040 = vmatpush1.bf16.msra.mxu1 %v5950_v56  ;;  %2295 = vmatprep.subr.bf16.mxu0 %v6033_v9  ;;  %v6100_v56 = vld [vmem:[#allocation8 + $0xc0] ss:$12 sps:$4 sm:$0xff]  }
 0x116   :  { %2041 = vmatprep.subr.bf16.mxu1 %v5958_v58  ;;  %v6108_v58 = vld [vmem:[#allocation8 + $0xdc] ss:$12 sps:$4 sm:$0xff]   ;;  %v6069_v9 = vld [vmem:[#allocation5 + $0x6dc] ss:$48 sps:$4 sm:$0xff]  }
 0x118   :  { %2296 = vmatpush1.bf16.msra.mxu0 %v6031_v11  ;;  %v6132_v11 = vld [vmem:[#allocation8 + $0x13c] ss:$12 sps:$4 sm:$0xff]  }
 0x119   :  { %2042 = vmatpush1.bf16.msra.mxu1 %v5956_v61  ;;  %2297 = vmatprep.subr.bf16.mxu0 %v6039_v12  ;;  %v6106_v61 = vld [vmem:[#allocation8 + $0xd8] ss:$12 sps:$4 sm:$0xff]   ;;  %v6067_v12 = vld [vmem:[#allocation5 + $0x6d8] ss:$48 sps:$4 sm:$0xff]  }
 0x11a   :  { %2156 = vmatprep.subr.bf16.mxu1 %v5964_v62  ;;  %v6114_v62 = vld [vmem:[#allocation8 + $0xf4] ss:$12 sps:$4 sm:$0xff]  }
 0x11c   :  { %2060 = vmatmul.mubr.bf16.vlgmr.msra.gmra.mrb[4].mxu1 %v6789_v28  ;;  %2298 = vmatpush1.bf16.msra.mxu0 %v6037_v15  ;;  %v6138_v15 = vld [vmem:[#allocation8 + $0x154] ss:$12 sps:$4 sm:$0xff]  }
 0x11d   :  { %2157 = vmatpush1.bf16.msra.mxu1 %v5962_v2  ;;  %2188 = vmatprep.mubr.bf16.mxu1 %v6800_v6  ;;  %v6112_v2 = vld [vmem:[#allocation8 + $0xf0] ss:$12 sps:$4 sm:$0xff]  }
 0x11e   :  { %2158 = vmatprep.subr.bf16.mxu1 %v5970_v3  ;;  %2299 = vmatprep.subr.bf16.mxu0 %v6045_v16  ;;  %v6055_v3 = vld [vmem:[#allocation5 + $0x618] ss:$48 sps:$4 sm:$0xff]  }
 0x11f   :  { %v6073_v16 = vld [vmem:[#allocation5 + $0x738] ss:$48 sps:$4 sm:$0xff]  }
 0x120   :  { %2300 = vmatpush1.bf16.msra.mxu0 %v6043_v20  ;;  %v6144_v20 = vld [vmem:[#allocation8 + $0x16c] ss:$12 sps:$4 sm:$0xff]  }
 0x121   :  { %2159 = vmatpush1.bf16.msra.mxu1 %v5968_v4  ;;  %4387 = vmatprep.subr.bf16.mxu0 %v6054_v21  ;;  %v6118_v4 = vld [vmem:[#allocation8 + $0x108] ss:$12 sps:$4 sm:$0xff]   ;;  %v6079_v21 = vld [vmem:[#allocation5 + $0x798] ss:$48 sps:$4 sm:$0xff]  }
 0x122   :  { %2160 = vmatprep.subr.bf16.mxu1 %v5976_v5  ;;  %v6126_v5 = vld [vmem:[#allocation8 + $0x124] ss:$12 sps:$4 sm:$0xff]  }
 0x123   :  { %2318 = vmatmul.mubr.bf16.vlgmr.msra.gmra.mrb[4].mxu0 %v6789_v28  ;;  %v6078_v28 = vld [vmem:[#allocation8 + $0x64] ss:$12 sps:$4 sm:$0xff]  }
 0x124   :  { %4388 = vmatpush1.bf16.msra.mxu0 %v6052_v24  ;;  %v6174_v24 = vld [vmem:[#allocation8 + $0x184] ss:$12 sps:$4 sm:$0xff]  }
 0x125   :  { %2161 = vmatpush1.bf16.msra.mxu1 %v5974_v8  ;;  %4389 = vmatprep.subr.bf16.mxu0 %v6060_v25  ;;  %v6061_v8 = vld [vmem:[#allocation5 + $0x678] ss:$48 sps:$4 sm:$0xff]  }
 0x126   :  { %2162 = vmatprep.subr.bf16.mxu1 %v5982_v10  ;;  %v6124_v10 = vld [vmem:[#allocation8 + $0x120] ss:$12 sps:$4 sm:$0xff]  }
 0x127   :  { %v6085_v25 = vld [vmem:[#allocation5 + $0x7f8] ss:$48 sps:$4 sm:$0xff]  }
 0x128   :  { %4390 = vmatpush1.bf16.msra.mxu0 %v6058_v29  ;;  %v6099_v29 = vld [vmem:[#allocation5 + $0x8bc] ss:$48 sps:$4 sm:$0xff]  }
 0x129   :  { %2163 = vmatpush1.bf16.msra.mxu1 %v5980_v13  ;;  %4391 = vmatprep.subr.bf16.mxu0 %v6066_v30  ;;  %v6075_v13 = vld [vmem:[#allocation5 + $0x73c] ss:$48 sps:$4 sm:$0xff]   ;;  %v6097_v30 = vld [vmem:[#allocation5 + $0x8b8] ss:$48 sps:$4 sm:$0xff]  }
 0x12a   :  { %2164 = vmatprep.subr.bf16.mxu1 %v5988_v14  ;;  %v6130_v14 = vld [vmem:[#allocation8 + $0x138] ss:$12 sps:$4 sm:$0xff]  }
 0x12c   :  { %4392 = vmatpush1.bf16.msra.mxu0 %v6064_v33  ;;  %v6111_v33 = vld [vmem:[#allocation5 + $0x8c] ss:$48 sps:$4 sm:$0xff]  }
 0x12d   :  { %2165 = vmatpush1.bf16.msra.mxu1 %v5986_v17  ;;  %4393 = vmatprep.subr.bf16.mxu0 %v6072_v34  ;;  %v6081_v17 = vld [vmem:[#allocation5 + $0x79c] ss:$48 sps:$4 sm:$0xff]  }
 0x12e   :  { %2166 = vmatprep.subr.bf16.mxu1 %v5994_v19  ;;  %v6136_v19 = vld [vmem:[#allocation8 + $0x150] ss:$12 sps:$4 sm:$0xff]  }
 0x12f   :  { %v6808_v34 = vld [vmem:[#allocation2 + $0x8] ss:$12 sps:$4 sm:$0xff]  }
 0x130   :  { %4394 = vmatpush1.bf16.msra.mxu0 %v6070_v37  ;;  %v6115_v37 = vld [vmem:[#allocation5 + $0xe8] ss:$48 sps:$4 sm:$0xff]  }
 0x131   :  { %2167 = vmatpush1.bf16.msra.mxu1 %v5992_v22  ;;  %4395 = vmatprep.subr.bf16.mxu0 %v6078_v28  ;;  %v6087_v22 = vld [vmem:[#allocation5 + $0x7fc] ss:$48 sps:$4 sm:$0xff]   ;;  %v382_v28 = vlaneseq }
 0x132   :  { %2168 = vmatprep.subr.bf16.mxu1 %v6000_v23  ;;  %v6142_v23 = vld [vmem:[#allocation8 + $0x168] ss:$12 sps:$4 sm:$0xff]  }
 0x134   :  { %4396 = vmatpush1.bf16.msra.mxu0 %v6076_v40  ;;  %v6812_v40 = vshrl.u32 %v382_v28, 7  ;;  %v6160_v28 = vld [vmem:[#allocation5 + $0x4a8] ss:$48 sps:$4 sm:$0xff]  }
 0x135   :  { %2169 = vmatpush1.bf16.msra.mxu1 %v5998_v26  ;;  %4397 = vmatprep.subr.bf16.mxu0 %v6084_v41  ;;  %v6093_v26 = vld [vmem:[#allocation5 + $0x85c] ss:$48 sps:$4 sm:$0xff]  }
 0x136   :  { %2170 = vmatprep.subr.bf16.mxu1 %v6006_v27  ;;  %v6091_v27 = vld [vmem:[#allocation5 + $0x858] ss:$48 sps:$4 sm:$0xff]   ;;  %v6129_v41 = vld [vmem:[#allocation5 + $0x1ac] ss:$48 sps:$4 sm:$0xff]  }
 0x138   :  { %4398 = vmatpush1.bf16.msra.mxu0 %v6082_v44  ;;  %v6817_v44 = vsub.s32 0, %v6812_v40 }
 0x139   :  { %2171 = vmatpush1.bf16.msra.mxu1 %v6004_v31  ;;  %4399 = vmatprep.subr.bf16.mxu0 %v6090_v45  ;;  %v6105_v31 = vld [vmem:[#allocation5 + $0x2c] ss:$48 sps:$4 sm:$0xff]  }
 0x13a   :  { %2172 = vmatprep.subr.bf16.mxu1 %v6012_v32  ;;  %v6103_v32 = vld [vmem:[#allocation5 + $0x28] ss:$48 sps:$4 sm:$0xff]   ;;  %v6135_v45 = vld [vmem:[#allocation5 + $0x20c] ss:$48 sps:$4 sm:$0xff]  }
 0x13c   :  { %4400 = vmatpush1.bf16.msra.mxu0 %v6088_v48  ;;  %v6141_v48 = vld [vmem:[#allocation5 + $0x26c] ss:$48 sps:$4 sm:$0xff]  }
 0x13d   :  { %2173 = vmatpush1.bf16.msra.mxu1 %v6010_v35  ;;  %4401 = vmatprep.subr.bf16.mxu0 %v6096_v49  ;;  %v6109_v35 = vld [vmem:[#allocation5 + $0x88] ss:$48 sps:$4 sm:$0xff]  }
 0x13e   :  { %2174 = vmatprep.subr.bf16.mxu1 %v6018_v36  ;;  %v6117_v36 = vld [vmem:[#allocation5 + $0xec] ss:$48 sps:$4 sm:$0xff]  }
 0x140   :  { %4402 = vmatpush1.bf16.msra.mxu0 %v6094_v52 }
 0x141   :  { %2175 = vmatpush1.bf16.msra.mxu1 %v6016_v38  ;;  %4403 = vmatprep.subr.bf16.mxu0 %v6102_v53  ;;  %v6123_v38 = vld [vmem:[#allocation5 + $0x14c] ss:$48 sps:$4 sm:$0xff]   ;;  %v6139_v53 = vld [vmem:[#allocation5 + $0x268] ss:$48 sps:$4 sm:$0xff]  }
 0x142   :  { %2176 = vmatprep.subr.bf16.mxu1 %v6024_v39  ;;  %v6121_v39 = vld [vmem:[#allocation5 + $0x148] ss:$48 sps:$4 sm:$0xff]  }
 0x144   :  { %4404 = vmatpush1.bf16.msra.mxu0 %v6100_v56 }
 0x145   :  { %2177 = vmatpush1.bf16.msra.mxu1 %v6022_v42  ;;  %4405 = vmatprep.subr.bf16.mxu0 %v6108_v58  ;;  %v6127_v42 = vld [vmem:[#allocation5 + $0x1a8] ss:$48 sps:$4 sm:$0xff]  }
 0x146   :  { %2178 = vmatprep.subr.bf16.mxu1 %v6030_v43  ;;  %v6814_v43 = vld [vmem:[#allocation7] sm:$0xff] }
 0x148   :  { %4406 = vmatpush1.bf16.msra.mxu0 %v6106_v61  ;;  %v6145_v61 = vld [vmem:[#allocation5 + $0x2c8] ss:$48 sps:$4 sm:$0xff]  }
 0x149   :  { %2179 = vmatpush1.bf16.msra.mxu1 %v6028_v46  ;;  %4407 = vmatprep.subr.bf16.mxu0 %v6114_v62  ;;  %v6133_v46 = vld [vmem:[#allocation5 + $0x208] ss:$48 sps:$4 sm:$0xff]  }
 0x14a   :  { %2180 = vmatprep.subr.bf16.mxu1 %v6036_v47  ;;  %v385_v47 = vrot.slane %v6814_v43, %v6817_v44 }
 0x14c   :  { %4408 = vmatpush1.bf16.msra.mxu0 %v6112_v2  ;;  %v6150_v2 = vld [vmem:[#allocation5 + $0x32c] ss:$48 sps:$4 sm:$0xff]  }
 0x14d   :  { %2181 = vmatpush1.bf16.msra.mxu1 %v6034_v50  ;;  %4409 = vmatprep.subr.bf16.mxu0 %v6120_v57 }
 0x14e   :  { %2182 = vmatprep.subr.bf16.mxu1 %v6042_v51 }
 0x150   :  { %4410 = vmatpush1.bf16.msra.mxu0 %v6118_v4  ;;  %v6148_v4 = vld [vmem:[#allocation5 + $0x328] ss:$48 sps:$4 sm:$0xff]  }
 0x151   :  { %2183 = vmatpush1.bf16.msra.mxu1 %v6040_v54  ;;  %4411 = vmatprep.subr.bf16.mxu0 %v6126_v5  ;;  %v6147_v54 = vld [vmem:[#allocation5 + $0x2cc] ss:$48 sps:$4 sm:$0xff]  }
 0x152   :  { %2184 = vmatprep.subr.bf16.mxu1 %v6048_v55  ;;  %v6172_v5 = vld [vmem:[#allocation8 + $0x180] ss:$12 sps:$4 sm:$0xff]  }
 0x154   :  { %4412 = vmatpush1.bf16.msra.mxu0 %v6124_v10  ;;  %v6151_v10 = vld [vmem:[#allocation5 + $0x388] ss:$48 sps:$4 sm:$0xff]  }
 0x155   :  { %2185 = vmatpush1.bf16.msra.mxu1 %v6046_v59  ;;  %4413 = vmatprep.subr.bf16.mxu0 %v6132_v11  ;;  %v6178_v11 = vld [vmem:[#allocation8 + $0x198] ss:$12 sps:$4 sm:$0xff]  }
 0x156   :  { %2186 = vmatprep.subr.bf16.mxu1 %v6051_v60 }
 0x158   :  { %4414 = vmatpush1.bf16.msra.mxu0 %v6130_v14  ;;  %v400_v14 = vsub.s32 4, %v6812_v40 }
 0x159   :  { %2187 = vmatpush1.bf16.msra.mxu1 %v6049_v0  ;;  %4415 = vmatprep.subr.bf16.mxu0 %v6138_v15  ;;  %v404_v15 = vsub.s32 5, %v6812_v40 }
 0x15a   :  { %2199 = vmatprep.subr.bf16.mxu1 %v6057_v1 }
 0x15c   :  { %2189 = vmatmul.mubr.bf16.vlgmr.msra.gmra.mrb[8].mxu1 %v6804_v7  ;;  %4416 = vmatpush1.bf16.msra.mxu0 %v6136_v19  ;;  %v6159_v19 = vld [vmem:[#allocation5 + $0x44c] ss:$48 sps:$4 sm:$0xff]  }
 0x15d   :  { %2200 = vmatpush1.bf16.msra.mxu1 %v6055_v3  ;;  %2231 = vmatprep.mubr.bf16.mxu1 %v6685_v63 }
 0x15e   :  { %2201 = vmatprep.subr.bf16.mxu1 %v6063_v18  ;;  %4417 = vmatprep.subr.bf16.mxu0 %v6144_v20  ;;  %v6192_v20 = vld [vmem:[#allocation8 + $0x1cc] ss:$12 sps:$4 sm:$0xff]  }
 0x160   :  { %4418 = vmatpush1.bf16.msra.mxu0 %v6142_v23  ;;  %v6157_v23 = vld [vmem:[#allocation5 + $0x448] ss:$48 sps:$4 sm:$0xff]  }
 0x161   :  { %2202 = vmatpush1.bf16.msra.mxu1 %v6061_v8  ;;  %4430 = vmatprep.subr.bf16.mxu0 %v6174_v24  ;;  %v6153_v8 = vld [vmem:[#allocation5 + $0x38c] ss:$48 sps:$4 sm:$0xff]   ;;  %v6190_v24 = vld [vmem:[#allocation8 + $0x1c8] ss:$12 sps:$4 sm:$0xff]  }
 0x162   :  { %2203 = vmatprep.subr.bf16.mxu1 %v6069_v9  ;;  %v6180_v9 = vld [vmem:[#allocation8 + $0x19c] ss:$12 sps:$4 sm:$0xff]  }
 0x165   :  { %2204 = vmatpush1.bf16.msra.mxu1 %v6067_v12  ;;  %v6156_v12 = vld [vmem:[#allocation5 + $0x3ec] ss:$48 sps:$4 sm:$0xff]  }
 0x166   :  { %2205 = vmatprep.subr.bf16.mxu1 %v6075_v13  ;;  %v6186_v13 = vld [vmem:[#allocation8 + $0x1b4] ss:$12 sps:$4 sm:$0xff]  }
 0x169   :  { %2206 = vmatpush1.bf16.msra.mxu1 %v6073_v16  ;;  %v6154_v16 = vld [vmem:[#allocation5 + $0x3e8] ss:$48 sps:$4 sm:$0xff]  }
 0x16a   :  { %2207 = vmatprep.subr.bf16.mxu1 %v6081_v17  ;;  %v6184_v17 = vld [vmem:[#allocation8 + $0x1b0] ss:$12 sps:$4 sm:$0xff]  }
 0x16d   :  { %2208 = vmatpush1.bf16.msra.mxu1 %v6079_v21  ;;  %v401_v21 = vrot.slane %v6814_v43, %v400_v14  ;;  %v6234_v14 = vld [vmem:[#allocation8 + $0x288] ss:$12 sps:$4 sm:$0xff]  }
 0x16e   :  { %2209 = vmatprep.subr.bf16.mxu1 %v6087_v22  ;;  %v405_v22 = vrot.slane %v6814_v43, %v404_v15  ;;  %v6241_v15 = vld [vmem:[#allocation8 + $0x2a4] ss:$12 sps:$4 sm:$0xff]  }
 0x171   :  { %2210 = vmatpush1.bf16.msra.mxu1 %v6085_v25  ;;  %v6162_v25 = vld [vmem:[#allocation5 + $0x4ac] ss:$48 sps:$4 sm:$0xff]  }
 0x172   :  { %2211 = vmatprep.subr.bf16.mxu1 %v6093_v26  ;;  %v6198_v26 = vld [vmem:[#allocation8 + $0x1e4] ss:$12 sps:$4 sm:$0xff]  }
 0x175   :  { %2212 = vmatpush1.bf16.msra.mxu1 %v6091_v27 }
 0x176   :  { %2213 = vmatprep.subr.bf16.mxu1 %v6099_v29 }
 0x179   :  { %2214 = vmatpush1.bf16.msra.mxu1 %v6097_v30 }
 0x17a   :  { %2328 = vmatprep.subr.bf16.mxu1 %v6105_v31 }
 0x17c   :  { %2232 = vmatmul.mubr.bf16.vlgmr.msra.gmra.mrb[8].mxu1 %v6808_v34 }
 0x17d   :  { %2329 = vmatpush1.bf16.msra.mxu1 %v6103_v32  ;;  %2360 = vmatprep.mubr.bf16.mxu1 %v6800_v6  ;;  %v6820_v6 = vsub.s32 1, %v6812_v40 }
 0x17e   :  { %2330 = vmatprep.subr.bf16.mxu1 %v6111_v33  ;;  %v6196_v33 = vld [vmem:[#allocation8 + $0x1e0] ss:$12 sps:$4 sm:$0xff]  }
 0x17f   :  { %v389_v49 = vrot.slane %v6814_v43, %v6820_v6 }
 0x181   :  { %2331 = vmatpush1.bf16.msra.mxu1 %v6109_v35 }
 0x182   :  { %2332 = vmatprep.subr.bf16.mxu1 %v6117_v36 }
 0x185   :  { %2333 = vmatpush1.bf16.msra.mxu1 %v6115_v37 }
 0x186   :  { %2334 = vmatprep.subr.bf16.mxu1 %v6123_v38 }
 0x189   :  { %2335 = vmatpush1.bf16.msra.mxu1 %v6121_v39 }
 0x18a   :  { %2336 = vmatprep.subr.bf16.mxu1 %v6129_v41  ;;  %v6204_v41 = vld [vmem:[#allocation8 + $0x1fc] ss:$12 sps:$4 sm:$0xff]  }
 0x18d   :  { %2337 = vmatpush1.bf16.msra.mxu1 %v6127_v42  ;;  %v6165_v42 = vld [vmem:[#allocation5 + $0x50c] ss:$48 sps:$4 sm:$0xff]  }
 0x18e   :  { %2338 = vmatprep.subr.bf16.mxu1 %v6135_v45 }
 0x18f   :  { %v1975_v50 = vpop.f32.mrb[0].mxu1 }
 0x190   :  { %v5627_v51 = vadd.f32 %v1975_v50, %v385_v47  ;;  %v1977_v52 = vpop.f32.mrb[1].mxu1  ;;  %v6168_v50 = vld [vmem:[#allocation5 + $0x56c] ss:$48 sps:$4 sm:$0xff]  }
 0x191   :  { %v5628_v55 = vadd.f32 %v1977_v52, %v389_v49  ;;  %v1979_v56 = vpop.f32.mrb[2].mxu1  ;;  %2339 = vmatpush1.bf16.msra.mxu1 %v6133_v46  ;;  %v6210_v52 = vld [vmem:[#allocation8 + $0x214] ss:$12 sps:$4 sm:$0xff]  }
 0x192   :  { %v5629_v58 = vadd.f32 %v1979_v56, %v385_v47  ;;  %v1981_v59 = vpop.f32.mrb[3].mxu1  ;;  %2340 = vmatprep.subr.bf16.mxu1 %v6141_v48  ;;  %v2414_v62 = vmax.f32 %v5627_v51, 0.0  ;;  %v6163_v47 = vld [vmem:[#allocation5 + $0x508] ss:$48 sps:$4 sm:$0xff]  }
 0x193   :  { %v5630_v60 = vadd.f32 %v1981_v59, %v389_v49  ;;  %v2415_v0 = vmax.f32 %v5628_v55, 0.0  ;;  %v6202_v49 = vld [vmem:[#allocation8 + $0x1f8] ss:$12 sps:$4 sm:$0xff]   ;;  %v6171_v55 = vld [vmem:[#allocation5 + $0x5cc] ss:$48 sps:$4 sm:$0xff]  }
 0x194   :  { %v2426_v1 = vmax.f32 %v5629_v58, 0.0  ;;  %v6216_v56 = vld [vmem:[#allocation8 + $0x22c] ss:$12 sps:$4 sm:$0xff]   ;;  %v6214_v59 = vld [vmem:[#allocation8 + $0x228] ss:$12 sps:$4 sm:$0xff]  }
 0x195   :  { %v2427_v3 = vmax.f32 %v5630_v60, 0.0  ;;  %2341 = vmatpush1.bf16.msra.mxu1 %v6139_v53  ;;  %v6166_v53 = vld [vmem:[#allocation5 + $0x568] ss:$48 sps:$4 sm:$0xff]   ;;  %v6177_v60 = vld [vmem:[#allocation5 + $0x62c] ss:$48 sps:$4 sm:$0xff]  }
 0x196   :  { %v6826_v57 = vpack.c.bf16 %v2426_v1, %v2414_v62  ;;  %2342 = vmatprep.subr.bf16.mxu1 %v6147_v54  ;;  %v2147_v27 = vpop.f32.mrb[0].mxu0  ;;  %v6208_v54 = vld [vmem:[#allocation8 + $0x210] ss:$12 sps:$4 sm:$0xff]   ;;  %v6220_v62 = vld [vmem:[#allocation8 + $0x240] ss:$12 sps:$4 sm:$0xff]  }
 0x197   :  { %v6828_v18 = vpack.c.bf16 %v2427_v3, %v2415_v0  ;;  %v5635_v29 = vadd.f32 %v2147_v27, %v401_v21  ;;  %v2149_v30 = vpop.f32.mrb[1].mxu0  ;;  %v6169_v58 = vld [vmem:[#allocation5 + $0x5c8] ss:$48 sps:$4 sm:$0xff]   ;;  %v6224_v3 = vld [vmem:[#allocation8 + $0x258] ss:$12 sps:$4 sm:$0xff]  }
 0x198   :  { %v5636_v31 = vadd.f32 %v2149_v30, %v405_v22  ;;  %v2151_v32 = vpop.f32.mrb[2].mxu0  ;;  %v6175_v0 = vld [vmem:[#allocation5 + $0x628] ss:$48 sps:$4 sm:$0xff]   ;;  %v6219_v27 = vld [vmem:[#allocation5 + $0x8cc] ss:$48 sps:$4 sm:$0xff]  }
 0x199   :  { %2343 = vmatpush1.bf16.msra.mxu1 %v6145_v61  ;;  %4419 = vmatprep.mubr.bf16.mxu0 %v6828_v18  ;;  %v2418_v35 = vmax.f32 %v5635_v29, 0.0  ;;  %v5637_v36 = vadd.f32 %v2151_v32, %v401_v21  ;;  %v2153_v37 = vpop.f32.mrb[3].mxu0  ;;  %v6222_v61 = vld [vmem:[#allocation8 + $0x244] ss:$12 sps:$4 sm:$0xff]   ;;  %v6226_v1 = vld [vmem:[#allocation8 + $0x25c] ss:$12 sps:$4 sm:$0xff]  }
 0x19a   :  { %4420 = vmatmul.mubr.bf16.vlgmr.msra.gmra.mrb[8].mxu0 %v6826_v57  ;;  %2344 = vmatprep.subr.bf16.mxu1 %v6150_v2  ;;  %v2419_v38 = vmax.f32 %v5636_v31, 0.0  ;;  %v5638_v39 = vadd.f32 %v2153_v37, %v405_v22  ;;  %v6183_v2 = vld [vmem:[#allocation5 + $0x68c] ss:$48 sps:$4 sm:$0xff]   ;;  %v6244_v21 = vld [vmem:[#allocation8 + $0x2b8] ss:$12 sps:$4 sm:$0xff]  }
 0x19b   :  { %4431 = vmatpush1.bf16.msra.mxu0 %v6172_v5  ;;  %v2430_v45 = vmax.f32 %v5637_v36, 0.0  ;;  %v6189_v5 = vld [vmem:[#allocation5 + $0x6ec] ss:$48 sps:$4 sm:$0xff]   ;;  %v6254_v29 = vld [vmem:[#allocation8 + $0x2e8] ss:$12 sps:$4 sm:$0xff]  }
 0x19c   :  { %4432 = vmatprep.subr.bf16.mxu0 %v6180_v9  ;;  %v2431_v46 = vmax.f32 %v5638_v39, 0.0  ;;  %v6187_v9 = vld [vmem:[#allocation5 + $0x6e8] ss:$48 sps:$4 sm:$0xff]   ;;  %v6213_v22 = vld [vmem:[#allocation5 + $0x86c] ss:$48 sps:$4 sm:$0xff]  }
 0x19d   :  { %2345 = vmatpush1.bf16.msra.mxu1 %v6148_v4  ;;  %v6836_v48 = vpack.c.bf16 %v2430_v45, %v2418_v35  ;;  %v6181_v4 = vld [vmem:[#allocation5 + $0x688] ss:$48 sps:$4 sm:$0xff]   ;;  %v6261_v31 = vld [vmem:[#allocation8 + $0x304] ss:$12 sps:$4 sm:$0xff]   ;;  %v6223_v32 = vld [vmem:[#allocation8 + $0xc8] ss:$12 sps:$4 sm:$0xff]  }
 0x19e   :  { %2346 = vmatprep.subr.bf16.mxu1 %v6153_v8  ;;  %v6838_v51 = vpack.c.bf16 %v2431_v46, %v2419_v38  ;;  %v6231_v8 = vld [vmem:[#allocation8 + $0x274] ss:$12 sps:$4 sm:$0xff]   ;;  %v6217_v30 = vld [vmem:[#allocation5 + $0x8c8] ss:$48 sps:$4 sm:$0xff]   ;;  %v6233_v37 = vld [vmem:[#allocation8 + $0xf8] ss:$12 sps:$4 sm:$0xff]  }
 0x19f   :  { %4433 = vmatpush1.bf16.msra.mxu0 %v6178_v11  ;;  %v6195_v11 = vld [vmem:[#allocation5 + $0x74c] ss:$48 sps:$4 sm:$0xff]   ;;  %v6247_v45 = vld [vmem:[#allocation8 + $0x68] ss:$12 sps:$4 sm:$0xff]  }
 0x1a0   :  { %4434 = vmatprep.subr.bf16.mxu0 %v6186_v13  ;;  %v6193_v13 = vld [vmem:[#allocation5 + $0x748] ss:$48 sps:$4 sm:$0xff]  }
 0x1a1   :  { %2347 = vmatpush1.bf16.msra.mxu1 %v6151_v10  ;;  %v6229_v10 = vld [vmem:[#allocation8 + $0x270] ss:$12 sps:$4 sm:$0xff]   ;;  %v6228_v35 = vld [vmem:[#allocation8 + $0xe0] ss:$12 sps:$4 sm:$0xff]  }
 0x1a2   :  { %2348 = vmatprep.subr.bf16.mxu1 %v6156_v12  ;;  %v6236_v12 = vld [vmem:[#allocation8 + $0x28c] ss:$12 sps:$4 sm:$0xff]   ;;  %v6238_v38 = vld [vmem:[#allocation8 + $0x110] ss:$12 sps:$4 sm:$0xff]  }
 0x1a3   :  { %4435 = vmatpush1.bf16.msra.mxu0 %v6184_v17  ;;  %v6207_v17 = vld [vmem:[#allocation5 + $0x80c] ss:$48 sps:$4 sm:$0xff]  }
 0x1a4   :  { %4436 = vmatprep.subr.bf16.mxu0 %v6192_v20  ;;  %v6205_v20 = vld [vmem:[#allocation5 + $0x808] ss:$48 sps:$4 sm:$0xff]  }
 0x1a5   :  { %2349 = vmatpush1.bf16.msra.mxu1 %v6154_v16  ;;  %v6199_v16 = vld [vmem:[#allocation5 + $0x7a8] ss:$48 sps:$4 sm:$0xff]  }
 0x1a6   :  { %2350 = vmatprep.subr.bf16.mxu1 %v6159_v19  ;;  %v6246_v19 = vld [vmem:[#allocation8 + $0x2bc] ss:$12 sps:$4 sm:$0xff]   ;;  %v6232_v36 = vld [vmem:[#allocation8 + $0x20] ss:$12 sps:$4 sm:$0xff]  }
 0x1a7   :  { %4437 = vmatpush1.bf16.msra.mxu0 %v6190_v24  ;;  %v6249_v24 = vld [vmem:[#allocation8 + $0x2d0] ss:$12 sps:$4 sm:$0xff]  }
 0x1a8   :  { %4438 = vmatprep.subr.bf16.mxu0 %v6198_v26  ;;  %v6256_v26 = vld [vmem:[#allocation8 + $0x2ec] ss:$12 sps:$4 sm:$0xff]   ;;  %v6242_v39 = vld [vmem:[#allocation8 + $0x50] ss:$12 sps:$4 sm:$0xff]  }
 0x1a9   :  { %2351 = vmatpush1.bf16.msra.mxu1 %v6157_v23  ;;  %v6251_v23 = vld [vmem:[#allocation8 + $0x2d4] ss:$12 sps:$4 sm:$0xff]  }
 0x1aa   :  { %2352 = vmatprep.subr.bf16.mxu1 %v6162_v25  ;;  %v6211_v25 = vld [vmem:[#allocation5 + $0x868] ss:$48 sps:$4 sm:$0xff]  }
 0x1ab   :  { %4439 = vmatpush1.bf16.msra.mxu0 %v6196_v33  ;;  %v6227_v33 = vld [vmem:[#allocation8 + $0x8] ss:$12 sps:$4 sm:$0xff]  }
 0x1ac   :  { %4440 = vmatprep.subr.bf16.mxu0 %v6204_v41  ;;  %v6243_v41 = vld [vmem:[#allocation8 + $0x128] ss:$12 sps:$4 sm:$0xff]  }
 0x1ad   :  { %2353 = vmatpush1.bf16.msra.mxu1 %v6160_v28  ;;  %v6237_v28 = vld [vmem:[#allocation8 + $0x38] ss:$12 sps:$4 sm:$0xff]  }
 0x1ae   :  { %2354 = vmatprep.subr.bf16.mxu1 %v6165_v42  ;;  %v6845_v42 = vsub.s32 2, %v6812_v40 }
 0x1af   :  { %4441 = vmatpush1.bf16.msra.mxu0 %v6202_v49  ;;  %v6252_v49 = vld [vmem:[#allocation8 + $0x80] ss:$12 sps:$4 sm:$0xff]  }
 0x1b0   :  { %4442 = vmatprep.subr.bf16.mxu0 %v6210_v52  ;;  %v393_v46 = vrot.slane %v6814_v43, %v6845_v42 }
 0x1b1   :  { %2355 = vmatpush1.bf16.msra.mxu1 %v6163_v47 }
 0x1b2   :  { %2356 = vmatprep.subr.bf16.mxu1 %v6168_v50  ;;  %v6253_v50 = vld [vmem:[#allocation8 + $0x158] ss:$12 sps:$4 sm:$0xff]  }
 0x1b3   :  { %4443 = vmatpush1.bf16.msra.mxu0 %v6208_v54 }
 0x1b4   :  { %4444 = vmatprep.subr.bf16.mxu0 %v6216_v56 }
 0x1b5   :  { %2357 = vmatpush1.bf16.msra.mxu1 %v6166_v53 }
 0x1b6   :  { %2358 = vmatprep.subr.bf16.mxu1 %v6171_v55 }
 0x1b7   :  { %4445 = vmatpush1.bf16.msra.mxu0 %v6214_v59 }
 0x1b8   :  { %4446 = vmatprep.subr.bf16.mxu0 %v6222_v61  ;;  %v6258_v61 = vld [vmem:[#allocation8 + $0x170] ss:$12 sps:$4 sm:$0xff]  }
 0x1b9   :  { %2359 = vmatpush1.bf16.msra.mxu1 %v6169_v58  ;;  %v6257_v58 = vld [vmem:[#allocation8 + $0x98] ss:$12 sps:$4 sm:$0xff]  }
 0x1ba   :  { %2371 = vmatprep.subr.bf16.mxu1 %v6177_v60 }
 0x1bb   :  { %4447 = vmatpush1.bf16.msra.mxu0 %v6220_v62 }
 0x1bc   :  { %2361 = vmatmul.mubr.bf16.vlgmr.msra.gmra.mrb[12].mxu1 %v6804_v7  ;;  %4448 = vmatprep.subr.bf16.mxu0 %v6226_v1  ;;  %v6201_v7 = vld [vmem:[#allocation5 + $0x7ac] ss:$48 sps:$4 sm:$0xff]  }
 0x1bd   :  { %2372 = vmatpush1.bf16.msra.mxu1 %v6175_v0  ;;  %2403 = vmatprep.mubr.bf16.mxu1 %v6685_v63  ;;  %v6239_v63 = vld [vmem:[#allocation8 + $0x2a0] ss:$12 sps:$4 sm:$0xff]  }
 0x1be   :  { %2373 = vmatprep.subr.bf16.mxu1 %v6183_v2 }
 0x1bf   :  { %4449 = vmatpush1.bf16.msra.mxu0 %v6224_v3 }
 0x1c0   :  { %4450 = vmatprep.subr.bf16.mxu0 %v6231_v8 }
 0x1c1   :  { %2374 = vmatpush1.bf16.msra.mxu1 %v6181_v4 }
 0x1c2   :  { %2375 = vmatprep.subr.bf16.mxu1 %v6189_v5  ;;  %v6263_v5 = vld [vmem:[#allocation8 + $0x248] ss:$12 sps:$4 sm:$0xff]  }
 0x1c3   :  { %4451 = vmatpush1.bf16.msra.mxu0 %v6229_v10  ;;  %v6266_v10 = vld [vmem:[#allocation8 + $0x31c] ss:$12 sps:$4 sm:$0xff]  }
 0x1c4   :  { %4452 = vmatprep.subr.bf16.mxu0 %v6236_v12  ;;  %v6268_v12 = vld [vmem:[#allocation8 + $0x260] ss:$12 sps:$4 sm:$0xff]  }
 0x1c5   :  { %2376 = vmatpush1.bf16.msra.mxu1 %v6187_v9  ;;  %v6259_v9 = vld [vmem:[#allocation8 + $0x300] ss:$12 sps:$4 sm:$0xff]  }
 0x1c6   :  { %2377 = vmatprep.subr.bf16.mxu1 %v6195_v11  ;;  %v6267_v11 = vld [vmem:[#allocation8 + $0x188] ss:$12 sps:$4 sm:$0xff]  }
 0x1c7   :  { %4453 = vmatpush1.bf16.msra.mxu0 %v6234_v14  ;;  %v6271_v14 = vld [vmem:[#allocation8 + $0x334] ss:$12 sps:$4 sm:$0xff]  }
 0x1c8   :  { %4454 = vmatprep.subr.bf16.mxu0 %v6241_v15  ;;  %v6273_v15 = vld [vmem:[#allocation8 + $0x278] ss:$12 sps:$4 sm:$0xff]  }
 0x1c9   :  { %2378 = vmatpush1.bf16.msra.mxu1 %v6193_v13  ;;  %v6264_v13 = vld [vmem:[#allocation8 + $0x318] ss:$12 sps:$4 sm:$0xff]  }
 0x1ca   :  { %2379 = vmatprep.subr.bf16.mxu1 %v6201_v7  ;;  %v6272_v7 = vld [vmem:[#allocation8 + $0x1a0] ss:$12 sps:$4 sm:$0xff]  }
 0x1cb   :  { %4455 = vmatpush1.bf16.msra.mxu0 %v6239_v63  ;;  %v6269_v63 = vld [vmem:[#allocation8 + $0x330] ss:$12 sps:$4 sm:$0xff]  }
 0x1cc   :  { %4456 = vmatprep.subr.bf16.mxu0 %v6246_v19  ;;  %v6277_v19 = vld [vmem:[#allocation8 + $0x1b8] ss:$12 sps:$4 sm:$0xff]  }
 0x1cd   :  { %2380 = vmatpush1.bf16.msra.mxu1 %v6199_v16  ;;  %v6858_v16 = vld [vmem:[#allocation7 + $0x8] sm:$0xf] }
 0x1ce   :  { %2381 = vmatprep.subr.bf16.mxu1 %v6207_v17  ;;  %v6276_v17 = vld [vmem:[#allocation8 + $0x34c] ss:$12 sps:$4 sm:$0xff]  }
 0x1cf   :  { %4457 = vmatpush1.bf16.msra.mxu0 %v6244_v21  ;;  %v421_v21 = vrot.slane %v6858_v16, %v6820_v6 }
 0x1d0   :  { %4458 = vmatprep.subr.bf16.mxu0 %v6251_v23  ;;  %v6281_v23 = vld [vmem:[#allocation8 + $0x364] ss:$12 sps:$4 sm:$0xff]  }
 0x1d1   :  { %2382 = vmatpush1.bf16.msra.mxu1 %v6205_v20  ;;  %v417_v20 = vrot.slane %v6858_v16, %v6817_v44 }
 0x1d2   :  { %2383 = vmatprep.subr.bf16.mxu1 %v6213_v22  ;;  %v6274_v22 = vld [vmem:[#allocation8 + $0x348] ss:$12 sps:$4 sm:$0xff]  }
 0x1d3   :  { %4459 = vmatpush1.bf16.msra.mxu0 %v6249_v24 }
 0x1d4   :  { %4460 = vmatprep.subr.bf16.mxu0 %v6256_v26 }
 0x1d5   :  { %2384 = vmatpush1.bf16.msra.mxu1 %v6211_v25  ;;  %v6282_v25 = vld [vmem:[#allocation8 + $0x1d0] ss:$12 sps:$4 sm:$0xff]  }
 0x1d6   :  { %2385 = vmatprep.subr.bf16.mxu1 %v6219_v27 }
 0x1d7   :  { %4461 = vmatpush1.bf16.msra.mxu0 %v6254_v29  ;;  %v6283_v29 = vld [vmem:[#allocation8 + $0x2a8] ss:$12 sps:$4 sm:$0xff]  }
 0x1d8   :  { %4473 = vmatprep.subr.bf16.mxu0 %v6261_v31 }
 0x1d9   :  { %2386 = vmatpush1.bf16.msra.mxu1 %v6217_v30 }
 0x1da   :  { %5495 = vmatprep.subr.bf16.mxu1 %v6223_v32  ;;  %v6279_v32 = vld [vmem:[#allocation8 + $0x360] ss:$12 sps:$4 sm:$0xff]  }
 0x1dc   :  { %2404 = vmatmul.mubr.bf16.vlgmr.msra.gmra.mrb[12].mxu1 %v6808_v34  ;;  %v396_v34 = vsub.s32 3, %v6812_v40 }
 0x1dd   :  { %5496 = vmatpush3.bf16.msra.mxu1 %v6227_v33  ;;  %4677 = vmatprep.mubr.bf16.mxu1 %v6828_v18  ;;  %v6248_v18 = vld [vmem:[#allocation8 + $0x140] ss:$12 sps:$4 sm:$0xff]  }
 0x1de   :  { %5497 = vmatprep.subr.bf16.mxu1 %v6228_v35  ;;  %v397_v47 = vrot.slane %v6814_v43, %v396_v34  ;;  %v6262_v43 = vld [vmem:[#allocation8 + $0xb0] ss:$12 sps:$4 sm:$0xff]  }
 0x1e1   :  { %5498 = vmatpush3.bf16.msra.mxu1 %v6232_v36 }
 0x1e2   :  { %5499 = vmatprep.subr.bf16.mxu1 %v6233_v37  ;;  %v6286_v37 = vld [vmem:[#allocation8 + $0x37c] ss:$12 sps:$4 sm:$0xff]  }
 0x1e5   :  { %5500 = vmatpush3.bf16.msra.mxu1 %v6237_v28 }
 0x1e6   :  { %5501 = vmatprep.subr.bf16.mxu1 %v6238_v38 }
 0x1e9   :  { %5502 = vmatpush3.bf16.msra.mxu1 %v6242_v39  ;;  %v6287_v39 = vld [vmem:[#allocation8 + $0x1e8] ss:$12 sps:$4 sm:$0xff]  }
 0x1ea   :  { %5503 = vmatprep.subr.bf16.mxu1 %v6243_v41 }
 0x1ed   :  { %5504 = vmatpush3.bf16.msra.mxu1 %v6247_v45  ;;  %v6288_v45 = vld [vmem:[#allocation8 + $0x2c0] ss:$12 sps:$4 sm:$0xff]  }
 0x1ee   :  { %5505 = vmatprep.subr.bf16.mxu1 %v6248_v18 }
 0x1ef   :  { %v2061_v52 = vpop.f32.mrb[4].mxu1 }
 0x1f0   :  { %v5631_v53 = vadd.f32 %v2061_v52, %v393_v46  ;;  %v2063_v54 = vpop.f32.mrb[5].mxu1  ;;  %v6292_v52 = vld [vmem:[#allocation8 + $0x200] ss:$12 sps:$4 sm:$0xff]  }
 0x1f1   :  { %v5632_v55 = vadd.f32 %v2063_v54, %v397_v47  ;;  %v2065_v56 = vpop.f32.mrb[6].mxu1  ;;  %5506 = vmatpush3.bf16.msra.mxu1 %v6252_v49  ;;  %v6291_v49 = vld [vmem:[#allocation8 + $0x394] ss:$12 sps:$4 sm:$0xff]   ;;  %v6289_v54 = vld [vmem:[#allocation8 + $0x390] ss:$12 sps:$4 sm:$0xff]  }
 0x1f2   :  { %v5633_v59 = vadd.f32 %v2065_v56, %v393_v46  ;;  %v2067_v60 = vpop.f32.mrb[7].mxu1  ;;  %5507 = vmatprep.subr.bf16.mxu1 %v6253_v50  ;;  %v2416_v0 = vmax.f32 %v5631_v53, 0.0  ;;  %v6284_v46 = vld [vmem:[#allocation8 + $0x378] ss:$12 sps:$4 sm:$0xff]  }
 0x1f3   :  { %v5634_v62 = vadd.f32 %v2067_v60, %v397_v47  ;;  %v2417_v2 = vmax.f32 %v5632_v55, 0.0  ;;  %v6293_v53 = vld [vmem:[#allocation8 + $0x2d8] ss:$12 sps:$4 sm:$0xff]  }
 0x1f4   :  { %v2428_v1 = vmax.f32 %v5633_v59, 0.0  ;;  %v6296_v55 = vld [vmem:[#allocation8 + $0x3ac] ss:$12 sps:$4 sm:$0xff]   ;;  %v6294_v59 = vld [vmem:[#allocation8 + $0x3a8] ss:$12 sps:$4 sm:$0xff]  }
 0x1f5   :  { %v2429_v3 = vmax.f32 %v5634_v62, 0.0  ;;  %5508 = vmatpush3.bf16.msra.mxu1 %v6257_v58  ;;  %v6297_v56 = vld [vmem:[#allocation8 + $0x218] ss:$12 sps:$4 sm:$0xff]   ;;  %v6298_v58 = vld [vmem:[#allocation8 + $0x2f0] ss:$12 sps:$4 sm:$0xff]  }
 0x1f6   :  { %v6853_v4 = vpack.c.bf16 %v2428_v1, %v2416_v0  ;;  %5509 = vmatprep.subr.bf16.mxu1 %v6258_v61  ;;  %v2319_v24 = vpop.f32.mrb[4].mxu0  ;;  %v6301_v60 = vld [vmem:[#allocation8 + $0x3c4] ss:$12 sps:$4 sm:$0xff]   ;;  %v6303_v62 = vld [vmem:[#allocation8 + $0x3c8] ss:$12 sps:$4 sm:$0xff]  }
 0x1f7   :  { %v2441_v8 = vpack.c.bf16 %v2429_v3, %v2417_v2  ;;  %v5643_v26 = vadd.f32 %v2319_v24, %v417_v20  ;;  %v2321_v27 = vpop.f32.mrb[5].mxu0  ;;  %v6302_v61 = vld [vmem:[#allocation8 + $0x230] ss:$12 sps:$4 sm:$0xff]   ;;  %v6299_v0 = vld [vmem:[#allocation8 + $0x3c0] ss:$12 sps:$4 sm:$0xff]  }
 0x1f8   :  { %v5644_v30 = vadd.f32 %v2321_v27, %v421_v21  ;;  %v2323_v31 = vpop.f32.mrb[6].mxu0  ;;  %v6306_v1 = vld [vmem:[#allocation8 + $0x3dc] ss:$12 sps:$4 sm:$0xff]   ;;  %v6308_v3 = vld [vmem:[#allocation8 + $0x3e0] ss:$12 sps:$4 sm:$0xff]  }
 0x1f9   :  { %4462 = vmatprep.mubr.bf16.mxu0 %v2441_v8  ;;  %5510 = vmatpush3.bf16.msra.mxu1 %v6262_v43  ;;  %v2422_v33 = vmax.f32 %v5643_v26, 0.0  ;;  %v5645_v35 = vadd.f32 %v2323_v31, %v417_v20  ;;  %v2325_v36 = vpop.f32.mrb[7].mxu0  ;;  %v6307_v2 = vld [vmem:[#allocation8 + $0x308] ss:$12 sps:$4 sm:$0xff]   ;;  %v6304_v43 = vld [vmem:[#allocation8 + $0x3d8] ss:$12 sps:$4 sm:$0xff]  }
 0x1fa   :  { %4463 = vmatmul.mubr.bf16.vlgmr.msra.gmra.mrb[8].mxu0 %v6853_v4  ;;  %5517 = vmatprep.subr.bf16.mxu1 %v6263_v5  ;;  %v2423_v28 = vmax.f32 %v5644_v30, 0.0  ;;  %v5646_v38 = vadd.f32 %v2325_v36, %v421_v21  ;;  %v6311_v5 = vld [vmem:[#allocation8 + $0x3f4] ss:$12 sps:$4 sm:$0xff]   ;;  %v6324_v20 = vld [vmem:[#allocation8 + $0x438] ss:$12 sps:$4 sm:$0xff]  }
 0x1fb   :  { %4474 = vmatpush1.bf16.msra.mxu0 %v6259_v9  ;;  %4505 = vmatprep.mubr.bf16.mxu0 %v6838_v51  ;;  %v2434_v41 = vmax.f32 %v5645_v35, 0.0  ;;  %v6313_v9 = vld [vmem:[#allocation8 + $0x3f8] ss:$12 sps:$4 sm:$0xff]   ;;  %v6332_v21 = vld [vmem:[#allocation8 + $0x380] ss:$12 sps:$4 sm:$0xff]  }
 0x1fc   :  { %4678 = vmatmul.mubr.bf16.vlgmr.msra.gmra.mrb[16].mxu1 %v6826_v57  ;;  %4475 = vmatprep.subr.bf16.mxu0 %v6266_v10  ;;  %v6278_v57 = vld [vmem:[#allocation8 + $0x290] ss:$12 sps:$4 sm:$0xff]   ;;  %v2435_v18 = vmax.f32 %v5646_v38, 0.0  ;;  %v6336_v24 = vld [vmem:[#allocation8 + $0x46c] ss:$12 sps:$4 sm:$0xff]  }
 0x1fd   :  { %5518 = vmatpush3.bf16.msra.mxu1 %v6267_v11  ;;  %4718 = vmatprep.mubr.bf16.mxu1 %v2441_v8  ;;  %v6864_v47 = vpack.c.bf16 %v2434_v41, %v2422_v33  ;;  %v6312_v8 = vld [vmem:[#allocation8 + $0x320] ss:$12 sps:$4 sm:$0xff]   ;;  %v6309_v10 = vld [vmem:[#allocation8 + $0x3f0] ss:$12 sps:$4 sm:$0xff]   ;;  %v6334_v27 = vld [vmem:[#allocation8 + $0x468] ss:$12 sps:$4 sm:$0xff]  }
 0x1fe   :  { %5519 = vmatprep.subr.bf16.mxu1 %v6268_v12  ;;  %v6866_v50 = vpack.c.bf16 %v2435_v18, %v2423_v28  ;;  %v6316_v11 = vld [vmem:[#allocation8 + $0x40c] ss:$12 sps:$4 sm:$0xff]   ;;  %v6338_v26 = vld [vmem:[#allocation8 + $0x470] ss:$12 sps:$4 sm:$0xff]   ;;  %v6343_v31 = vld [vmem:[#allocation8 + $0x548] ss:$12 sps:$4 sm:$0xff]  }
 0x1ff   :  { %4476 = vmatpush1.bf16.msra.mxu0 %v6264_v13  ;;  %v6317_v12 = vld [vmem:[#allocation8 + $0x338] ss:$12 sps:$4 sm:$0xff]   ;;  %v6318_v13 = vld [vmem:[#allocation8 + $0x410] ss:$12 sps:$4 sm:$0xff]   ;;  %v6347_v35 = vld [vmem:[#allocation8 + $0x488] ss:$12 sps:$4 sm:$0xff]  }
 0x200   :  { %4477 = vmatprep.subr.bf16.mxu0 %v6271_v14  ;;  %v6314_v14 = vld [vmem:[#allocation8 + $0x408] ss:$12 sps:$4 sm:$0xff]   ;;  %v6342_v30 = vld [vmem:[#allocation8 + $0x3b0] ss:$12 sps:$4 sm:$0xff]   ;;  %v6348_v36 = vld [vmem:[#allocation8 + $0x560] ss:$12 sps:$4 sm:$0xff]  }
 0x201   :  { %5520 = vmatpush3.bf16.msra.mxu1 %v6272_v7  ;;  %v6322_v7 = vld [vmem:[#allocation8 + $0x350] ss:$12 sps:$4 sm:$0xff]   ;;  %v6351_v28 = vld [vmem:[#allocation8 + $0x4b4] ss:$12 sps:$4 sm:$0xff]   ;;  %v6357_v18 = vld [vmem:[#allocation8 + $0x4b8] ss:$12 sps:$4 sm:$0xff]  }
 0x202   :  { %5521 = vmatprep.subr.bf16.mxu1 %v6273_v15  ;;  %v6323_v15 = vld [vmem:[#allocation8 + $0x428] ss:$12 sps:$4 sm:$0xff]   ;;  %v6352_v38 = vld [vmem:[#allocation8 + $0x4a0] ss:$12 sps:$4 sm:$0xff]   ;;  %v6349_v41 = vld [vmem:[#allocation8 + $0x4b0] ss:$12 sps:$4 sm:$0xff]  }
 0x203   :  { %4478 = vmatpush1.bf16.msra.mxu0 %v6269_v63  ;;  %v6326_v63 = vld [vmem:[#allocation8 + $0x43c] ss:$12 sps:$4 sm:$0xff]  }
 0x204   :  { %4479 = vmatprep.subr.bf16.mxu0 %v6276_v17  ;;  %v6327_v17 = vld [vmem:[#allocation8 + $0x368] ss:$12 sps:$4 sm:$0xff]  }
 0x205   :  { %5522 = vmatpush3.bf16.msra.mxu1 %v6277_v19  ;;  %v6328_v19 = vld [vmem:[#allocation8 + $0x440] ss:$12 sps:$4 sm:$0xff]   ;;  %v6346_v33 = vld [vmem:[#allocation8 + $0x49c] ss:$12 sps:$4 sm:$0xff]  }
 0x206   :  { %5523 = vmatprep.subr.bf16.mxu1 %v6278_v57  ;;  %v6331_v57 = vld [vmem:[#allocation8 + $0x454] ss:$12 sps:$4 sm:$0xff]  }
 0x207   :  { %4480 = vmatpush1.bf16.msra.mxu0 %v6274_v22  ;;  %v6333_v22 = vld [vmem:[#allocation8 + $0x458] ss:$12 sps:$4 sm:$0xff]  }
 0x208   :  { %4481 = vmatprep.subr.bf16.mxu0 %v6281_v23  ;;  %v6329_v23 = vld [vmem:[#allocation8 + $0x450] ss:$12 sps:$4 sm:$0xff]  }
 0x209   :  { %5524 = vmatpush3.bf16.msra.mxu1 %v6282_v25  ;;  %v6337_v25 = vld [vmem:[#allocation8 + $0x398] ss:$12 sps:$4 sm:$0xff]  }
 0x20a   :  { %5525 = vmatprep.subr.bf16.mxu1 %v6283_v29  ;;  %v6341_v29 = vld [vmem:[#allocation8 + $0x484] ss:$12 sps:$4 sm:$0xff]  }
 0x20b   :  { %4482 = vmatpush1.bf16.msra.mxu0 %v6279_v32  ;;  %v6339_v32 = vld [vmem:[#allocation8 + $0x480] ss:$12 sps:$4 sm:$0xff]  }
 0x20c   :  { %4483 = vmatprep.subr.bf16.mxu0 %v6286_v37  ;;  %v6344_v37 = vld [vmem:[#allocation8 + $0x498] ss:$12 sps:$4 sm:$0xff]  }
 0x20d   :  { %5526 = vmatpush3.bf16.msra.mxu1 %v6287_v39  ;;  %v6353_v39 = vld [vmem:[#allocation8 + $0x578] ss:$12 sps:$4 sm:$0xff]  }
 0x20e   :  { %5527 = vmatprep.subr.bf16.mxu1 %v6288_v45  ;;  %v6356_v45 = vld [vmem:[#allocation8 + $0x4cc] ss:$12 sps:$4 sm:$0xff]  }
 0x20f   :  { %4484 = vmatpush1.bf16.msra.mxu0 %v6284_v46  ;;  %v6358_v46 = vld [vmem:[#allocation8 + $0x590] ss:$12 sps:$4 sm:$0xff]  }
 0x210   :  { %4485 = vmatprep.subr.bf16.mxu0 %v6291_v49  ;;  %v6354_v49 = vld [vmem:[#allocation8 + $0x4c8] ss:$12 sps:$4 sm:$0xff]  }
 0x211   :  { %5528 = vmatpush3.bf16.msra.mxu1 %v6292_v52  ;;  %v6361_v52 = vld [vmem:[#allocation8 + $0x4e4] ss:$12 sps:$4 sm:$0xff]  }
 0x212   :  { %5529 = vmatprep.subr.bf16.mxu1 %v6293_v53  ;;  %v6363_v53 = vld [vmem:[#allocation8 + $0x5a8] ss:$12 sps:$4 sm:$0xff]  }
 0x213   :  { %4486 = vmatpush1.bf16.msra.mxu0 %v6289_v54  ;;  %v6359_v54 = vld [vmem:[#allocation8 + $0x4e0] ss:$12 sps:$4 sm:$0xff]  }
 0x214   :  { %4487 = vmatprep.subr.bf16.mxu0 %v6296_v55  ;;  %v6366_v55 = vld [vmem:[#allocation8 + $0x4fc] ss:$12 sps:$4 sm:$0xff]  }
 0x215   :  { %5530 = vmatpush3.bf16.msra.mxu1 %v6297_v56  ;;  %v408_v56 = vsub.s32 6, %v6812_v40 }
 0x216   :  { %5531 = vmatprep.subr.bf16.mxu1 %v6298_v58  ;;  %v6367_v58 = vld [vmem:[#allocation8 + $0x4e8] ss:$12 sps:$4 sm:$0xff]  }
 0x217   :  { %4488 = vmatpush1.bf16.msra.mxu0 %v6294_v59  ;;  %v412_v59 = vsub.s32 7, %v6812_v40  ;;  %v6486_v40 = vld [vmem:[#allocation8 + $0x784] ss:$12 sps:$4 sm:$0xff]  }
 0x218   :  { %4489 = vmatprep.subr.bf16.mxu0 %v6301_v60  ;;  %v6368_v60 = vld [vmem:[#allocation8 + $0x5c0] ss:$12 sps:$4 sm:$0xff]  }
 0x219   :  { %5532 = vmatpush3.bf16.msra.mxu1 %v6302_v61  ;;  %v6364_v61 = vld [vmem:[#allocation8 + $0x4f8] ss:$12 sps:$4 sm:$0xff]  }
 0x21a   :  { %5539 = vmatprep.subr.bf16.mxu1 %v6303_v62  ;;  %v6535_v62 = vld [vmem:[#allocation7] sm:$0xff] }
 0x21b   :  { %4490 = vmatpush1.bf16.msra.mxu0 %v6299_v0  ;;  %v409_v0 = vrot.slane %v6535_v62, %v408_v56  ;;  %v6413_v56 = vld [vmem:[#allocation8 + $0x758] ss:$12 sps:$4 sm:$0xff]  }
 0x21c   :  { %4719 = vmatmul.mubr.bf16.vlgmr.msra.gmra.mrb[20].mxu1 %v6853_v4  ;;  %4491 = vmatprep.subr.bf16.mxu0 %v6306_v1  ;;  %v6321_v4 = vld [vmem:[#allocation8 + $0x424] ss:$12 sps:$4 sm:$0xff]   ;;  %v6371_v1 = vld [vmem:[#allocation8 + $0x514] ss:$12 sps:$4 sm:$0xff]  }
 0x21d   :  { %5540 = vmatpush3.bf16.msra.mxu1 %v6307_v2  ;;  %4759 = vmatprep.mubr.bf16.mxu1 %v6838_v51  ;;  %v6319_v51 = vld [vmem:[#allocation8 + $0x420] ss:$12 sps:$4 sm:$0xff]   ;;  %v413_v2 = vrot.slane %v6535_v62, %v412_v59  ;;  %v6414_v62 = vld [vmem:[#allocation8 + $0x5e8] ss:$12 sps:$4 sm:$0xff]  }
 0x21e   :  { %5541 = vmatprep.subr.bf16.mxu1 %v6308_v3  ;;  %v6372_v3 = vld [vmem:[#allocation8 + $0x500] ss:$12 sps:$4 sm:$0xff]  }
 0x21f   :  { %4492 = vmatpush1.bf16.msra.mxu0 %v6304_v43  ;;  %v6373_v43 = vld [vmem:[#allocation8 + $0x5d8] ss:$12 sps:$4 sm:$0xff]  }
 0x220   :  { %4493 = vmatprep.subr.bf16.mxu0 %v6311_v5  ;;  %v6416_v59 = vld [vmem:[#allocation8 + $0x5ec] ss:$12 sps:$4 sm:$0xff]  }
 0x221   :  { %5542 = vmatpush3.bf16.msra.mxu1 %v6312_v8  ;;  %v6369_v8 = vld [vmem:[#allocation8 + $0x510] ss:$12 sps:$4 sm:$0xff]  }
 0x222   :  { %5543 = vmatprep.subr.bf16.mxu1 %v6313_v9 }
 0x223   :  { %4494 = vmatpush1.bf16.msra.mxu0 %v6309_v10 }
 0x224   :  { %4495 = vmatprep.subr.bf16.mxu0 %v6316_v11  ;;  %v6376_v11 = vld [vmem:[#allocation8 + $0x52c] ss:$12 sps:$4 sm:$0xff]  }
 0x225   :  { %5544 = vmatpush3.bf16.msra.mxu1 %v6317_v12 }
 0x226   :  { %5545 = vmatprep.subr.bf16.mxu1 %v6318_v13 }
 0x227   :  { %4496 = vmatpush1.bf16.msra.mxu0 %v6314_v14  ;;  %v6377_v14 = vld [vmem:[#allocation8 + $0x518] ss:$12 sps:$4 sm:$0xff]  }
 0x228   :  { %4497 = vmatprep.subr.bf16.mxu0 %v6321_v4 }
 0x229   :  { %5546 = vmatpush3.bf16.msra.mxu1 %v6322_v7 }
 0x22a   :  { %5547 = vmatprep.subr.bf16.mxu1 %v6323_v15 }
 0x22b   :  { %4498 = vmatpush1.bf16.msra.mxu0 %v6319_v51  ;;  %v6378_v51 = vld [vmem:[#allocation8 + $0x5f0] ss:$12 sps:$4 sm:$0xff]  }
 0x22c   :  { %4499 = vmatprep.subr.bf16.mxu0 %v6326_v63 }
 0x22d   :  { %5548 = vmatpush3.bf16.msra.mxu1 %v6327_v17  ;;  %v6374_v17 = vld [vmem:[#allocation8 + $0x528] ss:$12 sps:$4 sm:$0xff]  }
 0x22e   :  { %5549 = vmatprep.subr.bf16.mxu1 %v6328_v19 }
 0x22f   :  { %4500 = vmatpush1.bf16.msra.mxu0 %v6324_v20  ;;  %v6381_v20 = vld [vmem:[#allocation8 + $0x544] ss:$12 sps:$4 sm:$0xff]  }
 0x230   :  { %4501 = vmatprep.subr.bf16.mxu0 %v6331_v57 }
 0x231   :  { %5550 = vmatpush3.bf16.msra.mxu1 %v6332_v21 }
 0x232   :  { %5551 = vmatprep.subr.bf16.mxu1 %v6333_v22  ;;  %v6382_v22 = vld [vmem:[#allocation8 + $0x530] ss:$12 sps:$4 sm:$0xff]  }
 0x233   :  { %4502 = vmatpush1.bf16.msra.mxu0 %v6329_v23 }
 0x234   :  { %4503 = vmatprep.subr.bf16.mxu0 %v6336_v24  ;;  %v6383_v24 = vld [vmem:[#allocation8 + $0x6c8] ss:$12 sps:$4 sm:$0xff]  }
 0x235   :  { %5552 = vmatpush3.bf16.msra.mxu1 %v6337_v25 }
 0x236   :  { %5553 = vmatprep.subr.bf16.mxu1 %v6338_v26  ;;  %v6379_v26 = vld [vmem:[#allocation8 + $0x540] ss:$12 sps:$4 sm:$0xff]  }
 0x237   :  { %4504 = vmatpush1.bf16.msra.mxu0 %v6334_v27  ;;  %v6386_v27 = vld [vmem:[#allocation8 + $0x55c] ss:$12 sps:$4 sm:$0xff]  }
 0x238   :  { %4516 = vmatprep.subr.bf16.mxu0 %v6341_v29  ;;  %v6387_v29 = vld [vmem:[#allocation8 + $0x608] ss:$12 sps:$4 sm:$0xff]  }
 0x239   :  { %5554 = vmatpush3.bf16.msra.mxu1 %v6342_v30  ;;  %v6388_v30 = vld [vmem:[#allocation8 + $0x6e0] ss:$12 sps:$4 sm:$0xff]  }
 0x23a   :  { %4506 = vmatmul.mubr.bf16.vlgmr.msra.gmra.mrb[8].mxu0 %v6836_v48  ;;  %5561 = vmatprep.subr.bf16.mxu1 %v6343_v31  ;;  %v6384_v31 = vld [vmem:[#allocation8 + $0x558] ss:$12 sps:$4 sm:$0xff]  }
 0x23b   :  { %4517 = vmatpush1.bf16.msra.mxu0 %v6339_v32  ;;  %v6391_v32 = vld [vmem:[#allocation8 + $0x574] ss:$12 sps:$4 sm:$0xff]  }
 0x23c   :  { %4760 = vmatmul.mubr.bf16.vlgmr.msra.gmra.mrb[24].mxu1 %v6836_v48  ;;  %4518 = vmatprep.subr.bf16.mxu0 %v6346_v33  ;;  %v6362_v48 = vld [vmem:[#allocation8 + $0x4d0] ss:$12 sps:$4 sm:$0xff]   ;;  %v6392_v33 = vld [vmem:[#allocation8 + $0x620] ss:$12 sps:$4 sm:$0xff]  }
 0x23d   :  { %5562 = vmatpush3.bf16.msra.mxu1 %v6347_v35  ;;  %v6393_v35 = vld [vmem:[#allocation8 + $0x6f8] ss:$12 sps:$4 sm:$0xff]  }
 0x23e   :  { %5563 = vmatprep.subr.bf16.mxu1 %v6348_v36  ;;  %v6389_v36 = vld [vmem:[#allocation8 + $0x570] ss:$12 sps:$4 sm:$0xff]  }
 0x23f   :  { %4519 = vmatpush1.bf16.msra.mxu0 %v6344_v37  ;;  %v6396_v37 = vld [vmem:[#allocation8 + $0x58c] ss:$12 sps:$4 sm:$0xff]  }
 0x240   :  { %4520 = vmatprep.subr.bf16.mxu0 %v6351_v28  ;;  %v6397_v28 = vld [vmem:[#allocation8 + $0x638] ss:$12 sps:$4 sm:$0xff]  }
 0x241   :  { %5564 = vmatpush3.bf16.msra.mxu1 %v6352_v38  ;;  %v6398_v38 = vld [vmem:[#allocation8 + $0x710] ss:$12 sps:$4 sm:$0xff]  }
 0x242   :  { %5565 = vmatprep.subr.bf16.mxu1 %v6353_v39  ;;  %v6394_v39 = vld [vmem:[#allocation8 + $0x588] ss:$12 sps:$4 sm:$0xff]  }
 0x243   :  { %4521 = vmatpush1.bf16.msra.mxu0 %v6349_v41  ;;  %v6401_v41 = vld [vmem:[#allocation8 + $0x5a4] ss:$12 sps:$4 sm:$0xff]  }
 0x244   :  { %4522 = vmatprep.subr.bf16.mxu0 %v6356_v45  ;;  %v6402_v45 = vld [vmem:[#allocation8 + $0x650] ss:$12 sps:$4 sm:$0xff]  }
 0x245   :  { %5566 = vmatpush3.bf16.msra.mxu1 %v6357_v18  ;;  %v6403_v18 = vld [vmem:[#allocation8 + $0x728] ss:$12 sps:$4 sm:$0xff]  }
 0x246   :  { %5567 = vmatprep.subr.bf16.mxu1 %v6358_v46  ;;  %v6399_v46 = vld [vmem:[#allocation8 + $0x5a0] ss:$12 sps:$4 sm:$0xff]  }
 0x247   :  { %4523 = vmatpush1.bf16.msra.mxu0 %v6354_v49  ;;  %v6406_v49 = vld [vmem:[#allocation8 + $0x5bc] ss:$12 sps:$4 sm:$0xff]  }
 0x248   :  { %4524 = vmatprep.subr.bf16.mxu0 %v6361_v52  ;;  %v6407_v52 = vld [vmem:[#allocation8 + $0x668] ss:$12 sps:$4 sm:$0xff]  }
 0x249   :  { %5568 = vmatpush3.bf16.msra.mxu1 %v6362_v48  ;;  %v6408_v48 = vld [vmem:[#allocation8 + $0x740] ss:$12 sps:$4 sm:$0xff]  }
 0x24a   :  { %5569 = vmatprep.subr.bf16.mxu1 %v6363_v53  ;;  %v6404_v53 = vld [vmem:[#allocation8 + $0x5b8] ss:$12 sps:$4 sm:$0xff]  }
 0x24b   :  { %4525 = vmatpush1.bf16.msra.mxu0 %v6359_v54  ;;  %v6411_v54 = vld [vmem:[#allocation8 + $0x5d4] ss:$12 sps:$4 sm:$0xff]  }
 0x24c   :  { %4526 = vmatprep.subr.bf16.mxu0 %v6366_v55  ;;  %v6412_v55 = vld [vmem:[#allocation8 + $0x680] ss:$12 sps:$4 sm:$0xff]  }
 0x24d   :  { %5570 = vmatpush3.bf16.msra.mxu1 %v6367_v58  ;;  %v6409_v58 = vld [vmem:[#allocation8 + $0x5d0] ss:$12 sps:$4 sm:$0xff]  }
 0x24e   :  { %5571 = vmatprep.subr.bf16.mxu1 %v6368_v60  ;;  %v6417_v60 = vld [vmem:[#allocation8 + $0x698] ss:$12 sps:$4 sm:$0xff]  }
 0x24f   :  { %4527 = vmatpush1.bf16.msra.mxu0 %v6364_v61  ;;  %v2233_v5 = vpop.f32.mrb[8].mxu1  ;;  %v6418_v61 = vld [vmem:[#allocation8 + $0x770] ss:$12 sps:$4 sm:$0xff]  }
 0x250   :  { %v5639_v9 = vadd.f32 %v2233_v5, %v409_v0  ;;  %v2235_v10 = vpop.f32.mrb[9].mxu1  ;;  %4528 = vmatprep.subr.bf16.mxu0 %v6371_v1  ;;  %v6422_v1 = vld [vmem:[#allocation8 + $0x6b0] ss:$12 sps:$4 sm:$0xff]   ;;  %v6448_v5 = vld [vmem:[#allocation8 + $0x788] ss:$12 sps:$4 sm:$0xff]  }
 0x251   :  { %v5640_v12 = vadd.f32 %v2235_v10, %v413_v2  ;;  %v2237_v13 = vpop.f32.mrb[10].mxu1  ;;  %5572 = vmatpush3.bf16.msra.mxu1 %v6372_v3  ;;  %v6419_v3 = vld [vmem:[#allocation8 + $0x600] ss:$12 sps:$4 sm:$0xff]  }
 0x252   :  { %v2420_v4 = vmax.f32 %v5639_v9, 0.0  ;;  %v5641_v7 = vadd.f32 %v2237_v13, %v409_v0  ;;  %v2239_v15 = vpop.f32.mrb[11].mxu1  ;;  %5573 = vmatprep.subr.bf16.mxu1 %v6373_v43  ;;  %v6421_v0 = vld [vmem:[#allocation8 + $0x604] ss:$12 sps:$4 sm:$0xff]   ;;  %v6425_v43 = vld [vmem:[#allocation8 + $0x61c] ss:$12 sps:$4 sm:$0xff]  }
 0x253   :  { %v5642_v63 = vadd.f32 %v2239_v15, %v413_v2  ;;  %4529 = vmatpush1.bf16.msra.mxu0 %v6369_v8  ;;  %v2421_v57 = vmax.f32 %v5640_v12, 0.0  ;;  %v6447_v2 = vld [vmem:[#allocation8 + $0x848] ss:$12 sps:$4 sm:$0xff]   ;;  %v6452_v8 = vld [vmem:[#allocation8 + $0x860] ss:$12 sps:$4 sm:$0xff]  }
 0x254   :  { %v2432_v19 = vmax.f32 %v5641_v7, 0.0  ;;  %4530 = vmatprep.subr.bf16.mxu0 %v6376_v11  ;;  %v6423_v9 = vld [vmem:[#allocation8 + $0x618] ss:$12 sps:$4 sm:$0xff]   ;;  %v6428_v10 = vld [vmem:[#allocation8 + $0x634] ss:$12 sps:$4 sm:$0xff]  }
 0x255   :  { %v2433_v21 = vmax.f32 %v5642_v63, 0.0  ;;  %5574 = vmatpush3.bf16.msra.mxu1 %v6377_v14  ;;  %v6453_v11 = vld [vmem:[#allocation8 + $0x7a0] ss:$12 sps:$4 sm:$0xff]   ;;  %v6457_v12 = vld [vmem:[#allocation8 + $0x878] ss:$12 sps:$4 sm:$0xff]  }
 0x256   :  { %v6874_v23 = vpack.c.bf16 %v2432_v19, %v2420_v4  ;;  %5575 = vmatprep.subr.bf16.mxu1 %v6378_v51  ;;  %v6426_v13 = vld [vmem:[#allocation8 + $0x630] ss:$12 sps:$4 sm:$0xff]   ;;  %v6431_v14 = vld [vmem:[#allocation8 + $0x64c] ss:$12 sps:$4 sm:$0xff]   ;;  %v6429_v15 = vld [vmem:[#allocation8 + $0x648] ss:$12 sps:$4 sm:$0xff]  }
 0x257   :  { %v2445_v25 = vpack.c.bf16 %v2433_v21, %v2421_v57  ;;  %4531 = vmatpush1.bf16.msra.mxu0 %v6374_v17  ;;  %v6458_v4 = vld [vmem:[#allocation8 + $0x7b8] ss:$12 sps:$4 sm:$0xff]   ;;  %v6462_v7 = vld [vmem:[#allocation8 + $0x890] ss:$12 sps:$4 sm:$0xff]   ;;  %v6467_v63 = vld [vmem:[#allocation8 + $0x8a8] ss:$12 sps:$4 sm:$0xff]  }
 0x258   :  { %4532 = vmatprep.subr.bf16.mxu0 %v6381_v20  ;;  %v6463_v51 = vld [vmem:[#allocation8 + $0x7d0] ss:$12 sps:$4 sm:$0xff]   ;;  %v6432_v17 = vld [vmem:[#allocation8 + $0x660] ss:$12 sps:$4 sm:$0xff]   ;;  %v6468_v20 = vld [vmem:[#allocation8 + $0x7e8] ss:$12 sps:$4 sm:$0xff]  }
 0x259   :  { %4548 = vmatprep.mubr.bf16.mxu0 %v2445_v25  ;;  %5576 = vmatpush3.bf16.msra.mxu1 %v6382_v22  ;;  %v6437_v19 = vld [vmem:[#allocation8 + $0x67c] ss:$12 sps:$4 sm:$0xff]   ;;  %v6472_v57 = vld [vmem:[#allocation8 + $0x8c0] ss:$12 sps:$4 sm:$0xff]   ;;  %v6435_v21 = vld [vmem:[#allocation8 + $0x678] ss:$12 sps:$4 sm:$0xff]  }
 0x25a   :  { %4800 = vmatprep.mubr.bf16.mxu1 %v2445_v25  ;;  %5583 = vmatprep.subr.bf16.mxu1 %v6383_v24  ;;  %v6440_v22 = vld [vmem:[#allocation8 + $0x694] ss:$12 sps:$4 sm:$0xff]   ;;  %v6477_v24 = vld [vmem:[#allocation8 + $0x8d8] ss:$12 sps:$4 sm:$0xff]   ;;  %v6438_v25 = vld [vmem:[#allocation8 + $0x690] ss:$12 sps:$4 sm:$0xff]  }
 0x25b   :  { %4533 = vmatpush1.bf16.msra.mxu0 %v6379_v26  ;;  %v6443_v26 = vld [vmem:[#allocation8 + $0x6ac] ss:$12 sps:$4 sm:$0xff]  }
 0x25c   :  { %4801 = vmatmul.mubr.bf16.vlgmr.msra.gmra.mrb[28].mxu1 %v6874_v23  ;;  %4534 = vmatprep.subr.bf16.mxu0 %v6386_v27  ;;  %v6478_v27 = vld [vmem:[#allocation8 + $0x818] ss:$12 sps:$4 sm:$0xff]  }
 0x25d   :  { %5584 = vmatpush3.bf16.msra.mxu1 %v6387_v29  ;;  %4841 = vmatprep.mubr.bf16.mxu1 %v6866_v50  ;;  %v6482_v29 = vld [vmem:[#allocation8 + $0x8f0] ss:$12 sps:$4 sm:$0xff]  }
 0x25e   :  { %5585 = vmatprep.subr.bf16.mxu1 %v6388_v30  ;;  %v6441_v30 = vld [vmem:[#allocation8 + $0x6a8] ss:$12 sps:$4 sm:$0xff]  }
 0x25f   :  { %4535 = vmatpush1.bf16.msra.mxu0 %v6384_v31  ;;  %v6446_v31 = vld [vmem:[#allocation8 + $0x6c4] ss:$12 sps:$4 sm:$0xff]  }
 0x260   :  { %4536 = vmatprep.subr.bf16.mxu0 %v6391_v32  ;;  %v6483_v32 = vld [vmem:[#allocation8 + $0x830] ss:$12 sps:$4 sm:$0xff]  }
 0x261   :  { %5586 = vmatpush3.bf16.msra.mxu1 %v6392_v33  ;;  %v6444_v33 = vld [vmem:[#allocation8 + $0x6c0] ss:$12 sps:$4 sm:$0xff]  }
 0x262   :  { %5587 = vmatprep.subr.bf16.mxu1 %v6393_v35  ;;  %v6451_v35 = vld [vmem:[#allocation8 + $0x6dc] ss:$12 sps:$4 sm:$0xff]  }
 0x263   :  { %4537 = vmatpush1.bf16.msra.mxu0 %v6389_v36  ;;  %v6449_v36 = vld [vmem:[#allocation8 + $0x6d8] ss:$12 sps:$4 sm:$0xff]  }
 0x264   :  { %4538 = vmatprep.subr.bf16.mxu0 %v6396_v37  ;;  %v6456_v37 = vld [vmem:[#allocation8 + $0x6f4] ss:$12 sps:$4 sm:$0xff]  }
 0x265   :  { %5588 = vmatpush3.bf16.msra.mxu1 %v6397_v28  ;;  %v6454_v28 = vld [vmem:[#allocation8 + $0x6f0] ss:$12 sps:$4 sm:$0xff]  }
 0x266   :  { %5589 = vmatprep.subr.bf16.mxu1 %v6398_v38  ;;  %v6461_v38 = vld [vmem:[#allocation8 + $0x70c] ss:$12 sps:$4 sm:$0xff]  }
 0x267   :  { %4539 = vmatpush1.bf16.msra.mxu0 %v6394_v39  ;;  %v6459_v39 = vld [vmem:[#allocation8 + $0x708] ss:$12 sps:$4 sm:$0xff]  }
 0x268   :  { %4540 = vmatprep.subr.bf16.mxu0 %v6401_v41  ;;  %v6466_v41 = vld [vmem:[#allocation8 + $0x724] ss:$12 sps:$4 sm:$0xff]  }
 0x269   :  { %5590 = vmatpush3.bf16.msra.mxu1 %v6402_v45  ;;  %v6464_v45 = vld [vmem:[#allocation8 + $0x720] ss:$12 sps:$4 sm:$0xff]  }
 0x26a   :  { %5591 = vmatprep.subr.bf16.mxu1 %v6403_v18  ;;  %v6471_v18 = vld [vmem:[#allocation8 + $0x73c] ss:$12 sps:$4 sm:$0xff]  }
 0x26b   :  { %4541 = vmatpush1.bf16.msra.mxu0 %v6399_v46  ;;  %v6469_v46 = vld [vmem:[#allocation8 + $0x738] ss:$12 sps:$4 sm:$0xff]  }
 0x26c   :  { %4542 = vmatprep.subr.bf16.mxu0 %v6406_v49  ;;  %v425_v49 = vrot.slane %v6858_v16, %v6845_v42 }
 0x26d   :  { %5592 = vmatpush3.bf16.msra.mxu1 %v6407_v52  ;;  %v6476_v52 = vld [vmem:[#allocation8 + $0x754] ss:$12 sps:$4 sm:$0xff]  }
 0x26e   :  { %5593 = vmatprep.subr.bf16.mxu1 %v6408_v48  ;;  %v429_v48 = vrot.slane %v6858_v16, %v396_v34 }
 0x26f   :  { %4543 = vmatpush1.bf16.msra.mxu0 %v6404_v53 }
 0x270   :  { %4544 = vmatprep.subr.bf16.mxu0 %v6411_v54  ;;  %v6474_v54 = vld [vmem:[#allocation8 + $0x750] ss:$12 sps:$4 sm:$0xff]  }
 0x271   :  { %5594 = vmatpush3.bf16.msra.mxu1 %v6412_v55 }
 0x272   :  { %5595 = vmatprep.subr.bf16.mxu1 %v6413_v56 }
 0x273   :  { %4545 = vmatpush1.bf16.msra.mxu0 %v6409_v58  ;;  %v6481_v58 = vld [vmem:[#allocation8 + $0x76c] ss:$12 sps:$4 sm:$0xff]  }
 0x274   :  { %4546 = vmatprep.subr.bf16.mxu0 %v6416_v59 }
 0x275   :  { %5596 = vmatpush3.bf16.msra.mxu1 %v6417_v60 }
 0x276   :  { %5597 = vmatprep.subr.bf16.mxu1 %v6418_v61 }
 0x277   :  { %4547 = vmatpush1.bf16.msra.mxu0 %v6414_v62 }
 0x278   :  { %4559 = vmatprep.subr.bf16.mxu0 %v6421_v0 }
 0x279   :  { %5598 = vmatpush3.bf16.msra.mxu1 %v6422_v1 }
 0x27a   :  { %4549 = vmatmul.mubr.bf16.vlgmr.msra.gmra.mrb[8].mxu0 %v6874_v23  ;;  %5605 = vmatprep.subr.bf16.mxu1 %v6447_v2  ;;  %v6473_v23 = vld [vmem:[#allocation8 + $0x800] ss:$12 sps:$4 sm:$0xff]  }
 0x27b   :  { %4560 = vmatpush1.bf16.msra.mxu0 %v6419_v3  ;;  %4591 = vmatprep.mubr.bf16.mxu0 %v6866_v50  ;;  %v6434_v50 = vld [vmem:[#allocation8 + $0x664] ss:$12 sps:$4 sm:$0xff]   ;;  %v6479_v3 = vld [vmem:[#allocation8 + $0x768] ss:$12 sps:$4 sm:$0xff]  }
 0x27c   :  { %4842 = vmatmul.mubr.bf16.vlgmr.msra.gmra.mrb[32].mxu1 %v6864_v47  ;;  %4561 = vmatprep.subr.bf16.mxu0 %v6425_v43 }
 0x27d   :  { %5606 = vmatpush3.bf16.msra.mxu1 %v6448_v5 }
 0x27e   :  { %5607 = vmatprep.subr.bf16.mxu1 %v6452_v8  ;;  %v6484_v8 = vld [vmem:[#allocation8 + $0x780] ss:$12 sps:$4 sm:$0xff]  }
 0x27f   :  { %4562 = vmatpush1.bf16.msra.mxu0 %v6423_v9  ;;  %v6489_v9 = vld [vmem:[#allocation8 + $0x79c] ss:$12 sps:$4 sm:$0xff]  }
 0x280   :  { %4563 = vmatprep.subr.bf16.mxu0 %v6428_v10  ;;  %v6487_v10 = vld [vmem:[#allocation8 + $0x798] ss:$12 sps:$4 sm:$0xff]  }
 0x281   :  { %5608 = vmatpush3.bf16.msra.mxu1 %v6453_v11  ;;  %v6492_v11 = vld [vmem:[#allocation8 + $0x7b4] ss:$12 sps:$4 sm:$0xff]  }
 0x282   :  { %5609 = vmatprep.subr.bf16.mxu1 %v6457_v12  ;;  %v6490_v12 = vld [vmem:[#allocation8 + $0x7b0] ss:$12 sps:$4 sm:$0xff]  }
 0x283   :  { %4564 = vmatpush1.bf16.msra.mxu0 %v6426_v13  ;;  %v6495_v13 = vld [vmem:[#allocation8 + $0x7cc] ss:$12 sps:$4 sm:$0xff]  }
 0x284   :  { %4565 = vmatprep.subr.bf16.mxu0 %v6431_v14  ;;  %v6493_v14 = vld [vmem:[#allocation8 + $0x7c8] ss:$12 sps:$4 sm:$0xff]  }
 0x285   :  { %5610 = vmatpush3.bf16.msra.mxu1 %v6458_v4  ;;  %v6498_v4 = vld [vmem:[#allocation8 + $0x7e4] ss:$12 sps:$4 sm:$0xff]  }
 0x286   :  { %5611 = vmatprep.subr.bf16.mxu1 %v6462_v7  ;;  %v6496_v7 = vld [vmem:[#allocation8 + $0x7e0] ss:$12 sps:$4 sm:$0xff]  }
 0x287   :  { %4566 = vmatpush1.bf16.msra.mxu0 %v6429_v15  ;;  %v6501_v15 = vld [vmem:[#allocation8 + $0x7fc] ss:$12 sps:$4 sm:$0xff]  }
 0x288   :  { %4567 = vmatprep.subr.bf16.mxu0 %v6434_v50  ;;  %v6504_v50 = vld [vmem:[#allocation8 + $0x814] ss:$12 sps:$4 sm:$0xff]  }
 0x289   :  { %5612 = vmatpush3.bf16.msra.mxu1 %v6463_v51 }
 0x28a   :  { %5613 = vmatprep.subr.bf16.mxu1 %v6467_v63  ;;  %v6502_v63 = vld [vmem:[#allocation8 + $0x810] ss:$12 sps:$4 sm:$0xff]  }
 0x28b   :  { %4568 = vmatpush1.bf16.msra.mxu0 %v6432_v17 }
 0x28c   :  { %4569 = vmatprep.subr.bf16.mxu0 %v6437_v19  ;;  %v6507_v19 = vld [vmem:[#allocation8 + $0x82c] ss:$12 sps:$4 sm:$0xff]  }
 0x28d   :  { %5614 = vmatpush3.bf16.msra.mxu1 %v6468_v20 }
 0x28e   :  { %5615 = vmatprep.subr.bf16.mxu1 %v6472_v57 }
 0x28f   :  { %4570 = vmatpush1.bf16.msra.mxu0 %v6435_v21 }
 0x290   :  { %4571 = vmatprep.subr.bf16.mxu0 %v6440_v22 }
 0x291   :  { %5616 = vmatpush3.bf16.msra.mxu1 %v6473_v23  ;;  %v6505_v23 = vld [vmem:[#allocation8 + $0x828] ss:$12 sps:$4 sm:$0xff]  }
 0x292   :  { %5617 = vmatprep.subr.bf16.mxu1 %v6477_v24  ;;  %v6510_v24 = vld [vmem:[#allocation8 + $0x844] ss:$12 sps:$4 sm:$0xff]  }
 0x293   :  { %4572 = vmatpush1.bf16.msra.mxu0 %v6438_v25  ;;  %v6508_v25 = vld [vmem:[#allocation8 + $0x840] ss:$12 sps:$4 sm:$0xff]  }
 0x294   :  { %4573 = vmatprep.subr.bf16.mxu0 %v6443_v26  ;;  %v6513_v26 = vld [vmem:[#allocation8 + $0x85c] ss:$12 sps:$4 sm:$0xff]  }
 0x295   :  { %5618 = vmatpush3.bf16.msra.mxu1 %v6478_v27  ;;  %v6511_v27 = vld [vmem:[#allocation8 + $0x858] ss:$12 sps:$4 sm:$0xff]  }
 0x296   :  { %5619 = vmatprep.subr.bf16.mxu1 %v6482_v29  ;;  %v6516_v29 = vld [vmem:[#allocation8 + $0x874] ss:$12 sps:$4 sm:$0xff]  }
 0x297   :  { %4574 = vmatpush1.bf16.msra.mxu0 %v6441_v30  ;;  %v6514_v30 = vld [vmem:[#allocation8 + $0x870] ss:$12 sps:$4 sm:$0xff]  }
 0x298   :  { %4575 = vmatprep.subr.bf16.mxu0 %v6446_v31  ;;  %v6519_v31 = vld [vmem:[#allocation8 + $0x88c] ss:$12 sps:$4 sm:$0xff]  }
 0x299   :  { %5620 = vmatpush3.bf16.msra.mxu1 %v6483_v32  ;;  %v6517_v32 = vld [vmem:[#allocation8 + $0x888] ss:$12 sps:$4 sm:$0xff]  }
 0x29b   :  { %4576 = vmatpush1.bf16.msra.mxu0 %v6444_v33  ;;  %v6522_v33 = vld [vmem:[#allocation8 + $0x8a4] ss:$12 sps:$4 sm:$0xff]  }
 0x29c   :  { %4577 = vmatprep.subr.bf16.mxu0 %v6451_v35  ;;  %v6520_v35 = vld [vmem:[#allocation8 + $0x8a0] ss:$12 sps:$4 sm:$0xff]  }
 0x29f   :  { %4578 = vmatpush1.bf16.msra.mxu0 %v6449_v36  ;;  %v6525_v36 = vld [vmem:[#allocation8 + $0x8bc] ss:$12 sps:$4 sm:$0xff]  }
 0x2a0   :  { %4579 = vmatprep.subr.bf16.mxu0 %v6456_v37  ;;  %v2834_v37 = vld [vmem:[#allocation10] sm:$0x7] }
 0x2a3   :  { %4580 = vmatpush1.bf16.msra.mxu0 %v6454_v28  ;;  %v6523_v28 = vld [vmem:[#allocation8 + $0x8b8] ss:$12 sps:$4 sm:$0xff]  }
 0x2a4   :  { %4581 = vmatprep.subr.bf16.mxu0 %v6461_v38  ;;  %v6528_v38 = vld [vmem:[#allocation8 + $0x8d4] ss:$12 sps:$4 sm:$0xff]  }
 0x2a7   :  { %4582 = vmatpush1.bf16.msra.mxu0 %v6459_v39  ;;  %v2847_v39 = vrot.slane %v2834_v37, %v6845_v42 }
 0x2a8   :  { %4583 = vmatprep.subr.bf16.mxu0 %v6466_v41 }
 0x2ab   :  { %4584 = vmatpush1.bf16.msra.mxu0 %v6464_v45  ;;  %v6526_v45 = vld [vmem:[#allocation8 + $0x8d0] ss:$12 sps:$4 sm:$0xff]  }
 0x2ac   :  { %4585 = vmatprep.subr.bf16.mxu0 %v6471_v18 }
 0x2af   :  { %4586 = vmatpush1.bf16.msra.mxu0 %v6469_v46  ;;  %v2405_v53 = vpop.f32.mrb[12].mxu1  ;;  %v6531_v46 = vld [vmem:[#allocation8 + $0x8ec] ss:$12 sps:$4 sm:$0xff]  }
 0x2b0   :  { %v5647_v55 = vadd.f32 %v2405_v53, %v425_v49  ;;  %v2407_v56 = vpop.f32.mrb[13].mxu1  ;;  %4587 = vmatprep.subr.bf16.mxu0 %v6476_v52 }
 0x2b1   :  { %v5648_v59 = vadd.f32 %v2407_v56, %v429_v48  ;;  %v2409_v60 = vpop.f32.mrb[14].mxu1 }
 0x2b2   :  { %v2424_v61 = vmax.f32 %v5647_v55, 0.0  ;;  %v5649_v62 = vadd.f32 %v2409_v60, %v425_v49  ;;  %v2411_v0 = vpop.f32.mrb[15].mxu1 }
 0x2b3   :  { %v2425_v1 = vmax.f32 %v5648_v59, 0.0  ;;  %v5650_v2 = vadd.f32 %v2411_v0, %v429_v48  ;;  %4588 = vmatpush1.bf16.msra.mxu0 %v6474_v54 }
 0x2b4   :  { %v2436_v43 = vmax.f32 %v5649_v62, 0.0  ;;  %4589 = vmatprep.subr.bf16.mxu0 %v6481_v58  ;;  %v6529_v58 = vld [vmem:[#allocation8 + $0x8e8] ss:$12 sps:$4 sm:$0xff]  }
 0x2b5   :  { %v2437_v34 = vmax.f32 %v5650_v2, 0.0 }
 0x2b6   :  { %v6886_v16 = vpack.c.bf16 %v2436_v43, %v2424_v61 }
 0x2b7   :  { %v2449_v5 = vpack.c.bf16 %v2437_v34, %v2425_v1  ;;  %4590 = vmatpush1.bf16.msra.mxu0 %v6479_v3 }
 0x2b8   :  { %4602 = vmatprep.subr.bf16.mxu0 %v6486_v40 }
 0x2b9   :  { %4882 = vmatprep.mubr.bf16.mxu1 %v2449_v5 }
 0x2ba   :  { %4592 = vmatmul.mubr.bf16.vlgmr.msra.gmra.mrb[8].mxu0 %v6864_v47  ;;  %4883 = vmatmul.mubr.bf16.vlgmr.msra.gmra.mrb[36].mxu1 %v6886_v16  ;;  %v6499_v47 = vld [vmem:[#allocation8 + $0x7f8] ss:$12 sps:$4 sm:$0xff]  }
 0x2bb   :  { %4603 = vmatpush1.bf16.msra.mxu0 %v6484_v8  ;;  %4634 = vmatprep.mubr.bf16.mxu0 %v2449_v5 }
 0x2bc   :  { %4604 = vmatprep.subr.bf16.mxu0 %v6489_v9 }
 0x2bf   :  { %4605 = vmatpush1.bf16.msra.mxu0 %v6487_v10 }
 0x2c0   :  { %4606 = vmatprep.subr.bf16.mxu0 %v6492_v11 }
 0x2c3   :  { %4607 = vmatpush1.bf16.msra.mxu0 %v6490_v12 }
 0x2c4   :  { %4608 = vmatprep.subr.bf16.mxu0 %v6495_v13 }
 0x2c7   :  { %4609 = vmatpush1.bf16.msra.mxu0 %v6493_v14 }
 0x2c8   :  { %4610 = vmatprep.subr.bf16.mxu0 %v6498_v4 }
 0x2cb   :  { %4611 = vmatpush1.bf16.msra.mxu0 %v6496_v7 }
 0x2cc   :  { %4612 = vmatprep.subr.bf16.mxu0 %v6501_v15 }
 0x2cf   :  { %4613 = vmatpush1.bf16.msra.mxu0 %v6499_v47  ;;  %v5511_v51 = vpop.f32.mrb[16].mxu1 }
 0x2d0   :  { %v5512_v17 = vpop.f32.mrb[17].mxu1  ;;  %4614 = vmatprep.subr.bf16.mxu0 %v6504_v50 }
 0x2d1   :  { %v5513_v20 = vadd.f32 %v5512_v17, %v5511_v51  ;;  %v5514_v57 = vpop.f32.mrb[18].mxu1 }
 0x2d2   :  { %v5515_v21 = vpop.f32.mrb[19].mxu1 }
 0x2d3   :  { %4615 = vmatpush1.bf16.msra.mxu0 %v6502_v63  ;;  %v5516_v22 = vadd.f32 %v5515_v21, %v5514_v57  ;;  %v4680_v49 = vadd.f32 %v5513_v20, %v2847_v39 }
 0x2d4   :  { %4616 = vmatprep.subr.bf16.mxu0 %v6507_v19 }
 0x2d5   :  { %v4683_v54 = vadd.f32 %v5516_v22, %v2847_v39  ;;  %v2839_v22 = vrot.slane %v2834_v37, %v6817_v44 }
 0x2d7   :  { %4617 = vmatpush1.bf16.msra.mxu0 %v6505_v23  ;;  %v2843_v23 = vrot.slane %v2834_v37, %v6820_v6 }
 0x2d8   :  { %4618 = vmatprep.subr.bf16.mxu0 %v6510_v24 }
 0x2db   :  { %4619 = vmatpush1.bf16.msra.mxu0 %v6508_v25 }
 0x2dc   :  { %4620 = vmatprep.subr.bf16.mxu0 %v6513_v26 }
 0x2df   :  { %4621 = vmatpush1.bf16.msra.mxu0 %v6511_v27 }
 0x2e0   :  { %4622 = vmatprep.subr.bf16.mxu0 %v6516_v29 }
 0x2e3   :  { %4623 = vmatpush1.bf16.msra.mxu0 %v6514_v30 }
 0x2e4   :  { %4624 = vmatprep.subr.bf16.mxu0 %v6519_v31 }
 0x2e7   :  { %4625 = vmatpush1.bf16.msra.mxu0 %v6517_v32 }
 0x2e8   :  { %4626 = vmatprep.subr.bf16.mxu0 %v6522_v33 }
 0x2eb   :  { %4627 = vmatpush1.bf16.msra.mxu0 %v6520_v35 }
 0x2ec   :  { %4628 = vmatprep.subr.bf16.mxu0 %v6525_v36 }
 0x2ef   :  { %4629 = vmatpush1.bf16.msra.mxu0 %v6523_v28  ;;  %v5533_v41 = vpop.f32.mrb[20].mxu1 }
 0x2f0   :  { %v5534_v18 = vpop.f32.mrb[21].mxu1  ;;  %4630 = vmatprep.subr.bf16.mxu0 %v6528_v38 }
 0x2f1   :  { %v5535_v52 = vadd.f32 %v5534_v18, %v5533_v41  ;;  %v5536_v48 = vpop.f32.mrb[22].mxu1 }
 0x2f2   :  { %v5537_v53 = vpop.f32.mrb[23].mxu1 }
 0x2f3   :  { %v4721_v55 = vadd.f32 %v5535_v52, %v4680_v49  ;;  %4631 = vmatpush1.bf16.msra.mxu0 %v6526_v45  ;;  %v5538_v56 = vadd.f32 %v5537_v53, %v5536_v48 }
 0x2f4   :  { %4632 = vmatprep.subr.bf16.mxu0 %v6531_v46 }
 0x2f5   :  { %v4724_v59 = vadd.f32 %v5538_v56, %v4683_v54 }
 0x2f7   :  { %4633 = vmatpush1.bf16.msra.mxu0 %v6529_v58 }
 0x2fa   :  { %4635 = vmatmul.mubr.bf16.vlgmr.msra.gmra.mrb[8].mxu0 %v6886_v16 }
 0x30f   :  { %v5555_v42 = vpop.f32.mrb[24].mxu1 }
 0x310   :  { %v5556_v60 = vpop.f32.mrb[25].mxu1 }
 0x311   :  { %v5557_v61 = vadd.f32 %v5556_v60, %v5555_v42  ;;  %v5558_v62 = vpop.f32.mrb[26].mxu1 }
 0x312   :  { %v5559_v0 = vpop.f32.mrb[27].mxu1 }
 0x313   :  { %v4762_v1 = vadd.f32 %v5557_v61, %v4721_v55  ;;  %v5560_v2 = vadd.f32 %v5559_v0, %v5558_v62 }
 0x315   :  { %v4765_v3 = vadd.f32 %v5560_v2, %v4724_v59 }
 0x32f   :  { %v5577_v43 = vpop.f32.mrb[28].mxu1 }
 0x330   :  { %v5578_v40 = vpop.f32.mrb[29].mxu1 }
 0x331   :  { %v5579_v34 = vadd.f32 %v5578_v40, %v5577_v43  ;;  %v5580_v5 = vpop.f32.mrb[30].mxu1 }
 0x332   :  { %v5581_v8 = vpop.f32.mrb[31].mxu1 }
 0x333   :  { %v4803_v9 = vadd.f32 %v5579_v34, %v4762_v1  ;;  %v5582_v10 = vadd.f32 %v5581_v8, %v5580_v5 }
 0x335   :  { %v4806_v11 = vadd.f32 %v5582_v10, %v4765_v3 }
 0x34f   :  { %v5599_v12 = vpop.f32.mrb[32].mxu1 }
 0x350   :  { %v5600_v13 = vpop.f32.mrb[33].mxu1 }
 0x351   :  { %v5601_v14 = vadd.f32 %v5600_v13, %v5599_v12  ;;  %v5602_v16 = vpop.f32.mrb[34].mxu1 }
 0x352   :  { %v5603_v4 = vpop.f32.mrb[35].mxu1 }
 0x353   :  { %v4844_v7 = vadd.f32 %v5601_v14, %v4803_v9  ;;  %v5604_v15 = vadd.f32 %v5603_v4, %v5602_v16 }
 0x355   :  { %v4847_v47 = vadd.f32 %v5604_v15, %v4806_v11 }
 0x38d   :  { %v5621_v50 = vpop.f32.mrb[36].mxu1 }
 0x38e   :  { %v5622_v51 = vpop.f32.mrb[37].mxu1 }
 0x38f   :  { %v5623_v63 = vadd.f32 %v5622_v51, %v5621_v50  ;;  %v5624_v17 = vpop.f32.mrb[38].mxu1 }
 0x390   :  { %v5625_v19 = vpop.f32.mrb[39].mxu1 }
 0x391   :  { %v4885_v20 = vadd.f32 %v5623_v63, %v4844_v7  ;;  %v5626_v57 = vadd.f32 %v5625_v19, %v5624_v17 }
 0x393   :  { %4893 = vst [vmem:[#allocation11 + $0x10] sm:$0xff] %v4885_v20  ;;  %v4888_v21 = vadd.f32 %v5626_v57, %v4847_v47 }
 0x395   :  { %4896 = vst [vmem:[#allocation11 + $0x28] sm:$0xff] %v4888_v21 }
 0x3cd   :  { %v4636_v24 = vpop.f32.mrb[8].mxu0 }
 0x3ce   :  { %v5651_v25 = vadd.f32 %v4636_v24, %v2839_v22  ;;  %v4638_v26 = vpop.f32.mrb[9].mxu0 }
 0x3cf   :  { %v5652_v27 = vadd.f32 %v4638_v26, %v2843_v23  ;;  %v4640_v29 = vpop.f32.mrb[10].mxu0 }
 0x3d0   :  { %4891 = vst [vmem:[#allocation11] sm:$0xff] %v5651_v25  ;;  %v5653_v30 = vadd.f32 %v4640_v29, %v2839_v22  ;;  %v4642_v31 = vpop.f32.mrb[11].mxu0 }
 0x3d1   :  { %4892 = vst [vmem:[#allocation11 + $0x8] sm:$0xff] %v5652_v27  ;;  %v5654_v32 = vadd.f32 %v4642_v31, %v2843_v23 }
 0x3d2   :  { %4894 = vst [vmem:[#allocation11 + $0x18] sm:$0xff] %v5653_v30 }
 0x3d3   :  { %4895 = vst [vmem:[#allocation11 + $0x20] sm:$0xff] %v5654_v32 }
 0x3d4   :  { %6657 = shalt.err (!%p6654_p2)
}
 0x3d5   :  { %s6658_s6 = scalar_lea.hbm %s6911_s5, 768 }
 0x3d6   :  { %p6659_p3 = scmp.ne.s32.totalorder %s6911_s5, %s6658_s6  ;;  %p6662_p4 = scmp.lt.u32.totalorder %s6658_s6, %s6911_s5 }
 0x3d8   :  { %p6664_p5 = pnand %p6662_p4, %p6659_p3 }
 0x3da   :  { %6667 = shalt.err (!%p6664_p5)
}
 0x3db   :  { %s6687_s12 = smov 384   ;;  %s6688_s13 = smov 24  }
 0x3dc   :  { %4908 = dma.vmem_to_hbm [thread:$0]  %s4903_s28, 768, %s6911_s5, [#allocation4], %s6687_s12, %s6687_s12, %s6688_s13  }
 0x3dd   :  { %6674 = dma.done.wait [#allocation4], 768  }
 0x3de   :  { %6675 = vsyncadd [#allocation4], 4294966528 }
 0x3df   :  { %4912 = vsyncpa [#allocation3], 1 }
 0x3e0   :  { %4913 = vsyncpa [#allocation6], 1 }
 0x3e1   :  { %4914 = vsyncpa [#allocation9], 1 }
 0x3e2   :  { %4915 = vsyncpa [#allocation4], 1 }

</bundles_post_ra>
